<compile_context>
chip_gen: v7x
topology: tpu7x:2x2x1
jax: 0.10.0
libtpu: 0.0.40
codegen_flags: <defaults>
</compile_context>

<pallas_src>
import functools

import jax
import jax.numpy as jnp
import numpy as np
from jax import lax
from jax.experimental import pallas as pl
from jax.experimental.pallas import tpu as pltpu


# ----------------------------------------------------------------------------
# Static model dimensions (CIFAR: 3x32x32 input is implied by fc1 = 16*5*5).
# ----------------------------------------------------------------------------
K = 5
H1, C1_IN, C1_OUT = 32, 3, 6          # conv1: 32x32x3 -> 28x28x6 -> pool -> 14x14x6
HO1 = H1 - K + 1                      # 28
HP1 = HO1 // 2                        # 14
H2, C2_IN, C2_OUT = HP1, C1_OUT, 16   # conv2: 14x14x6 -> 10x10x16 -> pool -> 5x5x16
HO2 = H2 - K + 1                      # 10
HP2 = HO2 // 2                        # 5
FC_IN, FC1, FC2, FC3 = C2_OUT * HP2 * HP2, 120, 84, 10


def _dot_bf16(a, b):
    # bf16 MXU inputs, f32 accumulation: native fast path (no HIGHEST emulation).
    return jnp.dot(a.astype(jnp.bfloat16), b.astype(jnp.bfloat16),
                   preferred_element_type=jnp.float32)


# ----------------------------------------------------------------------------
# Pallas kernels
# ----------------------------------------------------------------------------
def _conv_relu_pool(a, wb_ref, b_ref, r_ref, s_ref, *, k, oc):
    """conv(valid, kxk) + bias + ReLU + 2x2/2 max-pool for one image.

    a      : [H, W*C]          channel-interleaved activation (value)
    wb_ref : [k, W*C, Wo*OC]   banded conv weights (one band per kernel row dh)
    b_ref  : [1, Wo*OC]        bias tiled across wo (f32)
    r_ref  : [Hp, Ho-1]        0/1 row-subsample (stride 2) matrix
    s_ref  : [(Wo-1)*OC, Wp*OC] 0/1 lane-block-subsample (stride 2) matrix
    returns: [Hp, Wp*OC]
    """
    h = a.shape[0]
    ho = h - k + 1
    nwo = wb_ref.shape[2]                       # Wo * OC
    # Convolution as k row-shifted 2-D matmuls, accumulated in f32.
    acc = jnp.zeros((ho, nwo), jnp.float32)
    for dh in range(k):
        acc = acc + _dot_bf16(a[dh:dh + ho, :], wb_ref[dh])
    y = jnp.maximum(acc + b_ref[...], 0.0)      # bias + ReLU in f32 (VPU)
    # 2x2 max-pool: pairwise maxes via unit-stride shifted slices, then the
    # stride-2 subsampling in both directions via tiny constant 0/1 matmuls
    # (avoids strided lane accesses and in-kernel reshapes/transposes).
    yw = jnp.maximum(y[:, :nwo - oc], y[:, oc:])      # max over (wo, wo+1)
    yh = jnp.maximum(yw[:ho - 1, :], yw[1:, :])       # max over (ho, ho+1)
    pooled = _dot_bf16(r_ref[...], yh)                # keep rows 0,2,4,...
    pooled = _dot_bf16(pooled, s_ref[...])            # keep w-blocks 0,2,4,...
    return pooled


def _features_kernel(a_ref, wb1_ref, cb1_ref, r1_ref, s1_ref,
                     wb2_ref, cb2_ref, r2_ref, s2_ref, o_ref):
    # One image per grid step; both conv stages stay in VMEM/vregs.
    h1 = _conv_relu_pool(a_ref[...], wb1_ref, cb1_ref, r1_ref, s1_ref,
                         k=K, oc=C1_OUT)              # [14, 14*6]
    h2 = _conv_relu_pool(h1, wb2_ref, cb2_ref, r2_ref, s2_ref,
                         k=K, oc=C2_OUT)              # [5, 5*16]
    o_ref[...] = h2.astype(o_ref.dtype)


def _mlp_kernel(x_ref, w1_ref, b1_ref, w2_ref, b2_ref, w3_ref, b3_ref, o_ref):
    # fc1 + ReLU + fc2 + ReLU + fc3, fused; all weights resident in VMEM.
    h = jnp.maximum(_dot_bf16(x_ref[...], w1_ref[...]) + b1_ref[...], 0.0)
    h = jnp.maximum(_dot_bf16(h, w2_ref[...]) + b2_ref[...], 0.0)
    o_ref[...] = (_dot_bf16(h, w3_ref[...]) + b3_ref[...]).astype(o_ref.dtype)


# ----------------------------------------------------------------------------
# pallas_call wrappers
# ----------------------------------------------------------------------------
def _resident(x):
    """Whole-array block with a constant index_map: fetched once, stays in VMEM."""
    return pl.BlockSpec(x.shape, lambda b: (0,) * x.ndim)


def pallas_features(a, kp):
    """a: [B, 32, 32*3] channel-interleaved activations -> [B, 5, 5*16]."""
    B = a.shape[0]
    return pl.pallas_call(
        _features_kernel,
        out_shape=jax.ShapeDtypeStruct((B, HP2, HP2 * C2_OUT), jnp.float32),
        grid=(B,),
        in_specs=[
            pl.BlockSpec((None, H1, H1 * C1_IN), lambda b: (b, 0, 0)),
            _resident(kp["wb1"]), _resident(kp["cb1"]),
            _resident(kp["r1"]), _resident(kp["s1"]),
            _resident(kp["wb2"]), _resident(kp["cb2"]),
            _resident(kp["r2"]), _resident(kp["s2"]),
        ],
        out_specs=pl.BlockSpec((None, HP2, HP2 * C2_OUT), lambda b: (b, 0, 0)),
        compiler_params=pltpu.CompilerParams(
            dimension_semantics=("parallel",)),   # v7x: both TCs split the batch
    )(a, kp["wb1"], kp["cb1"], kp["r1"], kp["s1"],
      kp["wb2"], kp["cb2"], kp["r2"], kp["s2"])


def pallas_mlp(x, kp):
    # Single VMEM-resident block: batch rows are tiny here.  For very large
    # batches this would get an M-tiled grid like the conv kernel's batch grid.
    B = x.shape[0]
    vmem = pl.BlockSpec(memory_space=pltpu.MemorySpace.VMEM)
    return pl.pallas_call(
        _mlp_kernel,
        out_shape=jax.ShapeDtypeStruct((B, FC3), jnp.float32),
        in_specs=[vmem] * 7,
        out_specs=vmem,
    )(x, kp["wf1"], kp["bf1"], kp["wf2"], kp["bf2"], kp["wf3"], kp["bf3"])


# ----------------------------------------------------------------------------
# One-time weight lowering (outside jit)
# ----------------------------------------------------------------------------
def _banded_conv_weight(w_oihw, w_in):
    """torch conv weight [OC,C,k,k] -> Wb[k, W*C, Wo*OC] with
    Wb[dh, w*C + c, wo*OC + oc] = w[oc, c, dh, w - wo]  (0 outside the band)."""
    oc_n, c_n, k, _ = w_oihw.shape
    wo_n = w_in - k + 1
    w = np.asarray(w_oihw, np.float32)
    wb = np.zeros((k, w_in * c_n, wo_n * oc_n), np.float32)
    for dh in range(k):
        for wo in range(wo_n):
            for dw in range(k):
                src = wo + dw
                wb[dh, src * c_n:(src + 1) * c_n,
                   wo * oc_n:(wo + 1) * oc_n] = w[:, :, dh, dw].T
    return jnp.asarray(wb, dtype=jnp.bfloat16)


def _pool_subsample_matrices(ho, wo, oc_n):
    """Constant 0/1 matrices so R @ yh @ S keeps rows 2*hp and w-blocks 2*wp."""
    hp, wp = ho // 2, wo // 2
    r = np.zeros((hp, ho - 1), np.float32)
    r[np.arange(hp), 2 * np.arange(hp)] = 1.0
    s = np.zeros(((wo - 1) * oc_n, wp * oc_n), np.float32)
    p = np.arange(wp * oc_n)
    s[2 * (p // oc_n) * oc_n + (p % oc_n), p] = 1.0
    return jnp.asarray(r, jnp.bfloat16), jnp.asarray(s, jnp.bfloat16)


def make_kernel_params(p):
    """Pre-transform all weights once, outside jit."""
    r1, s1 = _pool_subsample_matrices(HO1, HO1, C1_OUT)
    r2, s2 = _pool_subsample_matrices(HO2, HO2, C2_OUT)
    # torch .view(-1, 400) flattens (oc, hp, wp); our features flatten
    # (hp, wp, oc) -> permute fc1 rows accordingly.
    m = np.arange(FC_IN)
    hp = m // (HP2 * C2_OUT)
    wp = (m % (HP2 * C2_OUT)) // C2_OUT
    oc = m % C2_OUT
    torch_row = oc * (HP2 * HP2) + hp * HP2 + wp
    bf16 = jnp.bfloat16
    return dict(
        wb1=_banded_conv_weight(p["w1"], H1),
        cb1=jnp.tile(p["b1"], HO1).reshape(1, HO1 * C1_OUT),
        r1=r1, s1=s1,
        wb2=_banded_conv_weight(p["w2"], H2),
        cb2=jnp.tile(p["b2"], HO2).reshape(1, HO2 * C2_OUT),
        r2=r2, s2=s2,
        wf1=p["wf1"][jnp.asarray(torch_row), :].astype(bf16),
        bf1=p["bf1"].reshape(1, FC1),
        wf2=p["wf2"].astype(bf16), bf2=p["bf2"].reshape(1, FC2),
        wf3=p["wf3"].astype(bf16), bf3=p["bf3"].reshape(1, FC3),
    )


# ----------------------------------------------------------------------------
# Model
# ----------------------------------------------------------------------------
def init_params(key):
    ks = jax.random.split(key, 10)

    def u(k, shape, fan_in):
        bound = 1.0 / np.sqrt(fan_in)
        return jax.random.uniform(k, shape, jnp.float32, -bound, bound)

    return dict(
        w1=u(ks[0], (6, 3, 5, 5), 3 * 25),    b1=u(ks[1], (6,),   3 * 25),
        w2=u(ks[2], (16, 6, 5, 5), 6 * 25),   b2=u(ks[3], (16,),  6 * 25),
        wf1=u(ks[4], (FC_IN, FC1), FC_IN),    bf1=u(ks[5], (FC1,), FC_IN),
        wf2=u(ks[6], (FC1, FC2), FC1),        bf2=u(ks[7], (FC2,), FC1),
        wf3=u(ks[8], (FC2, FC3), FC2),        bf3=u(ks[9], (FC3,), FC2),
    )


def simple_cifar_cnn_forward(x, kp):
    # x: [B, 3, 32, 32] float32 (NCHW, as in PyTorch).
    B = x.shape[0]
    a = jnp.transpose(x, (0, 2, 3, 1)).reshape(B, H1, H1 * C1_IN)   # [B, 32, 96]
    feat = pallas_features(a, kp)                                   # [B, 5, 80]
    return pallas_mlp(feat.reshape(B, FC_IN), kp)                   # [B, 10]


# Pure-JAX reference (correctness check only, uses the original weights).
def reference_forward(x, p):
    hp = lax.Precision.HIGHEST

    def conv(x, w, b):
        y = lax.conv_general_dilated(
            x, w, (1, 1), "VALID",
            dimension_numbers=("NCHW", "OIHW", "NCHW"), precision=hp)
        return jnp.maximum(y + b[None, :, None, None], 0.0)

    def pool(x):
        return lax.reduce_window(x, -jnp.inf, lax.max,
                                 (1, 1, 2, 2), (1, 1, 2, 2), "VALID")

    x = pool(conv(x, p["w1"], p["b1"]))
    x = pool(conv(x, p["w2"], p["b2"]))
    x = x.reshape(x.shape[0], -1)
    x = jnp.maximum(jnp.dot(x, p["wf1"], precision=hp) + p["bf1"], 0.0)
    x = jnp.maximum(jnp.dot(x, p["wf2"], precision=hp) + p["bf2"], 0.0)
    return jnp.dot(x, p["wf3"], precision=hp) + p["bf3"]


if __name__ == "__main__":
    key = jax.random.PRNGKey(0)
    kx, kw = jax.random.split(key)
    x = jax.random.normal(kx, (2, 3, 32, 32), dtype=jnp.float32)
    params = init_params(kw)
    kparams = make_kernel_params(params)          # weight lowering: once, outside jit

    fwd = jax.jit(simple_cifar_cnn_forward)
    out = fwd(x, kparams)
    jax.block_until_ready(out)

    ref = reference_forward(x, params)
    assert out.shape == (2, FC3) and out.dtype == jnp.float32
    np.testing.assert_allclose(np.asarray(out), np.asarray(ref),
                               rtol=5e-2, atol=5e-2)
    print("KERNEL_OK")
</pallas_src>

<mosaic_0001>
module attributes {stable_mosaic.version = 11 : i64} {
  func.func @_features_kernel(%arg0: i32, %arg1: memref<1x32x96xf32, #tpu.memory_space<vmem>>, %arg2: memref<5x96x168xbf16, #tpu.memory_space<vmem>>, %arg3: memref<1x168xf32, #tpu.memory_space<vmem>>, %arg4: memref<14x27xbf16, #tpu.memory_space<vmem>>, %arg5: memref<162x84xbf16, #tpu.memory_space<vmem>>, %arg6: memref<5x84x160xbf16, #tpu.memory_space<vmem>>, %arg7: memref<1x160xf32, #tpu.memory_space<vmem>>, %arg8: memref<5x9xbf16, #tpu.memory_space<vmem>>, %arg9: memref<144x80xbf16, #tpu.memory_space<vmem>>, %arg10: memref<1x5x80xf32, #tpu.memory_space<vmem>>) attributes {dimension_semantics = [#tpu.dimension_semantics<parallel>], iteration_bounds = array<i64: 2>, scalar_prefetch = 0 : i64, scratch_operands = 0 : i64, tpu.core_type = #tpu.core_type<tc>, window_params = [{transform_indices = @transform_0, window_bounds = array<i64: 1, 32, 96>}, {pipeline_mode = #tpu.pipeline_mode<synchronous>, transform_indices = @transform_1, window_bounds = array<i64: 5, 96, 168>}, {pipeline_mode = #tpu.pipeline_mode<synchronous>, transform_indices = @transform_2, window_bounds = array<i64: 1, 168>}, {pipeline_mode = #tpu.pipeline_mode<synchronous>, transform_indices = @transform_3, window_bounds = array<i64: 14, 27>}, {pipeline_mode = #tpu.pipeline_mode<synchronous>, transform_indices = @transform_4, window_bounds = array<i64: 162, 84>}, {pipeline_mode = #tpu.pipeline_mode<synchronous>, transform_indices = @transform_5, window_bounds = array<i64: 5, 84, 160>}, {pipeline_mode = #tpu.pipeline_mode<synchronous>, transform_indices = @transform_6, window_bounds = array<i64: 1, 160>}, {pipeline_mode = #tpu.pipeline_mode<synchronous>, transform_indices = @transform_7, window_bounds = array<i64: 5, 9>}, {pipeline_mode = #tpu.pipeline_mode<synchronous>, transform_indices = @transform_8, window_bounds = array<i64: 144, 80>}, {transform_indices = @transform_9, window_bounds = array<i64: 1, 5, 80>}]} {
    %c0 = arith.constant 0 : index
    %c0_0 = arith.constant 0 : index
    %c0_1 = arith.constant 0 : index
    %0 = vector.load %arg1[%c0, %c0_0, %c0_1] : memref<1x32x96xf32, #tpu.memory_space<vmem>>, vector<1x32x96xf32>
    %1 = vector.shape_cast %0 : vector<1x32x96xf32> to vector<32x96xf32>
    %cst = arith.constant 0.000000e+00 : f32
    %2 = vector.broadcast %cst : f32 to vector<28x168xf32>
    %3 = vector.extract_strided_slice %1 {offsets = [0, 0], sizes = [28, 96], strides = [1, 1]} : vector<32x96xf32> to vector<28x96xf32>
    %c0_2 = arith.constant 0 : index
    %c0_3 = arith.constant 0 : index
    %c0_4 = arith.constant 0 : index
    %4 = vector.load %arg2[%c0_2, %c0_3, %c0_4] : memref<5x96x168xbf16, #tpu.memory_space<vmem>>, vector<1x96x168xbf16>
    %5 = vector.shape_cast %4 : vector<1x96x168xbf16> to vector<96x168xbf16>
    %6 = arith.truncf %3 : vector<28x96xf32> to vector<28x96xbf16>
    %cst_5 = arith.constant dense<0.000000e+00> : vector<28x168xf32>
    %7 = tpu.matmul %6, %5, %cst_5 {dimension_numbers = #tpu.dot_dimension_numbers<[1], [0], [0], [1], [0, 0, 1, 1], [], []>} : vector<28x96xbf16>, vector<96x168xbf16>, vector<28x168xf32> -> vector<28x168xf32>
    %8 = arith.addf %2, %7 : vector<28x168xf32>
    %9 = vector.extract_strided_slice %1 {offsets = [1, 0], sizes = [28, 96], strides = [1, 1]} : vector<32x96xf32> to vector<28x96xf32>
    %c1 = arith.constant 1 : index
    %c0_6 = arith.constant 0 : index
    %c0_7 = arith.constant 0 : index
    %10 = vector.load %arg2[%c1, %c0_6, %c0_7] : memref<5x96x168xbf16, #tpu.memory_space<vmem>>, vector<1x96x168xbf16>
    %11 = vector.shape_cast %10 : vector<1x96x168xbf16> to vector<96x168xbf16>
    %12 = arith.truncf %9 : vector<28x96xf32> to vector<28x96xbf16>
    %cst_8 = arith.constant dense<0.000000e+00> : vector<28x168xf32>
    %13 = tpu.matmul %12, %11, %cst_8 {dimension_numbers = #tpu.dot_dimension_numbers<[1], [0], [0], [1], [0, 0, 1, 1], [], []>} : vector<28x96xbf16>, vector<96x168xbf16>, vector<28x168xf32> -> vector<28x168xf32>
    %14 = arith.addf %8, %13 : vector<28x168xf32>
    %15 = vector.extract_strided_slice %1 {offsets = [2, 0], sizes = [28, 96], strides = [1, 1]} : vector<32x96xf32> to vector<28x96xf32>
    %c2 = arith.constant 2 : index
    %c0_9 = arith.constant 0 : index
    %c0_10 = arith.constant 0 : index
    %16 = vector.load %arg2[%c2, %c0_9, %c0_10] : memref<5x96x168xbf16, #tpu.memory_space<vmem>>, vector<1x96x168xbf16>
    %17 = vector.shape_cast %16 : vector<1x96x168xbf16> to vector<96x168xbf16>
    %18 = arith.truncf %15 : vector<28x96xf32> to vector<28x96xbf16>
    %cst_11 = arith.constant dense<0.000000e+00> : vector<28x168xf32>
    %19 = tpu.matmul %18, %17, %cst_11 {dimension_numbers = #tpu.dot_dimension_numbers<[1], [0], [0], [1], [0, 0, 1, 1], [], []>} : vector<28x96xbf16>, vector<96x168xbf16>, vector<28x168xf32> -> vector<28x168xf32>
    %20 = arith.addf %14, %19 : vector<28x168xf32>
    %21 = vector.extract_strided_slice %1 {offsets = [3, 0], sizes = [28, 96], strides = [1, 1]} : vector<32x96xf32> to vector<28x96xf32>
    %c3 = arith.constant 3 : index
    %c0_12 = arith.constant 0 : index
    %c0_13 = arith.constant 0 : index
    %22 = vector.load %arg2[%c3, %c0_12, %c0_13] : memref<5x96x168xbf16, #tpu.memory_space<vmem>>, vector<1x96x168xbf16>
    %23 = vector.shape_cast %22 : vector<1x96x168xbf16> to vector<96x168xbf16>
    %24 = arith.truncf %21 : vector<28x96xf32> to vector<28x96xbf16>
    %cst_14 = arith.constant dense<0.000000e+00> : vector<28x168xf32>
    %25 = tpu.matmul %24, %23, %cst_14 {dimension_numbers = #tpu.dot_dimension_numbers<[1], [0], [0], [1], [0, 0, 1, 1], [], []>} : vector<28x96xbf16>, vector<96x168xbf16>, vector<28x168xf32> -> vector<28x168xf32>
    %26 = arith.addf %20, %25 : vector<28x168xf32>
    %27 = vector.extract_strided_slice %1 {offsets = [4, 0], sizes = [28, 96], strides = [1, 1]} : vector<32x96xf32> to vector<28x96xf32>
    %c4 = arith.constant 4 : index
    %c0_15 = arith.constant 0 : index
    %c0_16 = arith.constant 0 : index
    %28 = vector.load %arg2[%c4, %c0_15, %c0_16] : memref<5x96x168xbf16, #tpu.memory_space<vmem>>, vector<1x96x168xbf16>
    %29 = vector.shape_cast %28 : vector<1x96x168xbf16> to vector<96x168xbf16>
    %30 = arith.truncf %27 : vector<28x96xf32> to vector<28x96xbf16>
    %cst_17 = arith.constant dense<0.000000e+00> : vector<28x168xf32>
    %31 = tpu.matmul %30, %29, %cst_17 {dimension_numbers = #tpu.dot_dimension_numbers<[1], [0], [0], [1], [0, 0, 1, 1], [], []>} : vector<28x96xbf16>, vector<96x168xbf16>, vector<28x168xf32> -> vector<28x168xf32>
    %32 = arith.addf %26, %31 : vector<28x168xf32>
    %c0_18 = arith.constant 0 : index
    %c0_19 = arith.constant 0 : index
    %33 = vector.load %arg3[%c0_18, %c0_19] : memref<1x168xf32, #tpu.memory_space<vmem>>, vector<1x168xf32>
    %34 = vector.broadcast %33 : vector<1x168xf32> to vector<28x168xf32>
    %35 = arith.addf %32, %34 : vector<28x168xf32>
    %cst_20 = arith.constant 0.000000e+00 : f32
    %36 = vector.broadcast %cst_20 : f32 to vector<28x168xf32>
    %37 = arith.maximumf %35, %36 : vector<28x168xf32>
    %38 = vector.extract_strided_slice %37 {offsets = [0, 0], sizes = [28, 162], strides = [1, 1]} : vector<28x168xf32> to vector<28x162xf32>
    %39 = vector.extract_strided_slice %37 {offsets = [0, 6], sizes = [28, 162], strides = [1, 1]} : vector<28x168xf32> to vector<28x162xf32>
    %40 = arith.maximumf %38, %39 : vector<28x162xf32>
    %41 = vector.extract_strided_slice %40 {offsets = [0, 0], sizes = [27, 162], strides = [1, 1]} : vector<28x162xf32> to vector<27x162xf32>
    %42 = vector.extract_strided_slice %40 {offsets = [1, 0], sizes = [27, 162], strides = [1, 1]} : vector<28x162xf32> to vector<27x162xf32>
    %43 = arith.maximumf %41, %42 : vector<27x162xf32>
    %c0_21 = arith.constant 0 : index
    %c0_22 = arith.constant 0 : index
    %44 = vector.load %arg4[%c0_21, %c0_22] : memref<14x27xbf16, #tpu.memory_space<vmem>>, vector<14x27xbf16>
    %45 = arith.truncf %43 : vector<27x162xf32> to vector<27x162xbf16>
    %cst_23 = arith.constant dense<0.000000e+00> : vector<14x162xf32>
    %46 = tpu.matmul %44, %45, %cst_23 {dimension_numbers = #tpu.dot_dimension_numbers<[1], [0], [0], [1], [0, 0, 1, 1], [], []>} : vector<14x27xbf16>, vector<27x162xbf16>, vector<14x162xf32> -> vector<14x162xf32>
    %c0_24 = arith.constant 0 : index
    %c0_25 = arith.constant 0 : index
    %47 = vector.load %arg5[%c0_24, %c0_25] : memref<162x84xbf16, #tpu.memory_space<vmem>>, vector<162x84xbf16>
    %48 = arith.truncf %46 : vector<14x162xf32> to vector<14x162xbf16>
    %cst_26 = arith.constant dense<0.000000e+00> : vector<14x84xf32>
    %49 = tpu.matmul %48, %47, %cst_26 {dimension_numbers = #tpu.dot_dimension_numbers<[1], [0], [0], [1], [0, 0, 1, 1], [], []>} : vector<14x162xbf16>, vector<162x84xbf16>, vector<14x84xf32> -> vector<14x84xf32>
    %cst_27 = arith.constant 0.000000e+00 : f32
    %50 = vector.broadcast %cst_27 : f32 to vector<10x160xf32>
    %51 = vector.extract_strided_slice %49 {offsets = [0, 0], sizes = [10, 84], strides = [1, 1]} : vector<14x84xf32> to vector<10x84xf32>
    %c0_28 = arith.constant 0 : index
    %c0_29 = arith.constant 0 : index
    %c0_30 = arith.constant 0 : index
    %52 = vector.load %arg6[%c0_28, %c0_29, %c0_30] : memref<5x84x160xbf16, #tpu.memory_space<vmem>>, vector<1x84x160xbf16>
    %53 = vector.shape_cast %52 : vector<1x84x160xbf16> to vector<84x160xbf16>
    %54 = arith.truncf %51 : vector<10x84xf32> to vector<10x84xbf16>
    %cst_31 = arith.constant dense<0.000000e+00> : vector<10x160xf32>
    %55 = tpu.matmul %54, %53, %cst_31 {dimension_numbers = #tpu.dot_dimension_numbers<[1], [0], [0], [1], [0, 0, 1, 1], [], []>} : vector<10x84xbf16>, vector<84x160xbf16>, vector<10x160xf32> -> vector<10x160xf32>
    %56 = arith.addf %50, %55 : vector<10x160xf32>
    %57 = vector.extract_strided_slice %49 {offsets = [1, 0], sizes = [10, 84], strides = [1, 1]} : vector<14x84xf32> to vector<10x84xf32>
    %c1_32 = arith.constant 1 : index
    %c0_33 = arith.constant 0 : index
    %c0_34 = arith.constant 0 : index
    %58 = vector.load %arg6[%c1_32, %c0_33, %c0_34] : memref<5x84x160xbf16, #tpu.memory_space<vmem>>, vector<1x84x160xbf16>
    %59 = vector.shape_cast %58 : vector<1x84x160xbf16> to vector<84x160xbf16>
    %60 = arith.truncf %57 : vector<10x84xf32> to vector<10x84xbf16>
    %cst_35 = arith.constant dense<0.000000e+00> : vector<10x160xf32>
    %61 = tpu.matmul %60, %59, %cst_35 {dimension_numbers = #tpu.dot_dimension_numbers<[1], [0], [0], [1], [0, 0, 1, 1], [], []>} : vector<10x84xbf16>, vector<84x160xbf16>, vector<10x160xf32> -> vector<10x160xf32>
    %62 = arith.addf %56, %61 : vector<10x160xf32>
    %63 = vector.extract_strided_slice %49 {offsets = [2, 0], sizes = [10, 84], strides = [1, 1]} : vector<14x84xf32> to vector<10x84xf32>
    %c2_36 = arith.constant 2 : index
    %c0_37 = arith.constant 0 : index
    %c0_38 = arith.constant 0 : index
    %64 = vector.load %arg6[%c2_36, %c0_37, %c0_38] : memref<5x84x160xbf16, #tpu.memory_space<vmem>>, vector<1x84x160xbf16>
    %65 = vector.shape_cast %64 : vector<1x84x160xbf16> to vector<84x160xbf16>
    %66 = arith.truncf %63 : vector<10x84xf32> to vector<10x84xbf16>
    %cst_39 = arith.constant dense<0.000000e+00> : vector<10x160xf32>
    %67 = tpu.matmul %66, %65, %cst_39 {dimension_numbers = #tpu.dot_dimension_numbers<[1], [0], [0], [1], [0, 0, 1, 1], [], []>} : vector<10x84xbf16>, vector<84x160xbf16>, vector<10x160xf32> -> vector<10x160xf32>
    %68 = arith.addf %62, %67 : vector<10x160xf32>
    %69 = vector.extract_strided_slice %49 {offsets = [3, 0], sizes = [10, 84], strides = [1, 1]} : vector<14x84xf32> to vector<10x84xf32>
    %c3_40 = arith.constant 3 : index
    %c0_41 = arith.constant 0 : index
    %c0_42 = arith.constant 0 : index
    %70 = vector.load %arg6[%c3_40, %c0_41, %c0_42] : memref<5x84x160xbf16, #tpu.memory_space<vmem>>, vector<1x84x160xbf16>
    %71 = vector.shape_cast %70 : vector<1x84x160xbf16> to vector<84x160xbf16>
    %72 = arith.truncf %69 : vector<10x84xf32> to vector<10x84xbf16>
    %cst_43 = arith.constant dense<0.000000e+00> : vector<10x160xf32>
    %73 = tpu.matmul %72, %71, %cst_43 {dimension_numbers = #tpu.dot_dimension_numbers<[1], [0], [0], [1], [0, 0, 1, 1], [], []>} : vector<10x84xbf16>, vector<84x160xbf16>, vector<10x160xf32> -> vector<10x160xf32>
    %74 = arith.addf %68, %73 : vector<10x160xf32>
    %75 = vector.extract_strided_slice %49 {offsets = [4, 0], sizes = [10, 84], strides = [1, 1]} : vector<14x84xf32> to vector<10x84xf32>
    %c4_44 = arith.constant 4 : index
    %c0_45 = arith.constant 0 : index
    %c0_46 = arith.constant 0 : index
    %76 = vector.load %arg6[%c4_44, %c0_45, %c0_46] : memref<5x84x160xbf16, #tpu.memory_space<vmem>>, vector<1x84x160xbf16>
    %77 = vector.shape_cast %76 : vector<1x84x160xbf16> to vector<84x160xbf16>
    %78 = arith.truncf %75 : vector<10x84xf32> to vector<10x84xbf16>
    %cst_47 = arith.constant dense<0.000000e+00> : vector<10x160xf32>
    %79 = tpu.matmul %78, %77, %cst_47 {dimension_numbers = #tpu.dot_dimension_numbers<[1], [0], [0], [1], [0, 0, 1, 1], [], []>} : vector<10x84xbf16>, vector<84x160xbf16>, vector<10x160xf32> -> vector<10x160xf32>
    %80 = arith.addf %74, %79 : vector<10x160xf32>
    %c0_48 = arith.constant 0 : index
    %c0_49 = arith.constant 0 : index
    %81 = vector.load %arg7[%c0_48, %c0_49] : memref<1x160xf32, #tpu.memory_space<vmem>>, vector<1x160xf32>
    %82 = vector.broadcast %81 : vector<1x160xf32> to vector<10x160xf32>
    %83 = arith.addf %80, %82 : vector<10x160xf32>
    %cst_50 = arith.constant 0.000000e+00 : f32
    %84 = vector.broadcast %cst_50 : f32 to vector<10x160xf32>
    %85 = arith.maximumf %83, %84 : vector<10x160xf32>
    %86 = vector.extract_strided_slice %85 {offsets = [0, 0], sizes = [10, 144], strides = [1, 1]} : vector<10x160xf32> to vector<10x144xf32>
    %87 = vector.extract_strided_slice %85 {offsets = [0, 16], sizes = [10, 144], strides = [1, 1]} : vector<10x160xf32> to vector<10x144xf32>
    %88 = arith.maximumf %86, %87 : vector<10x144xf32>
    %89 = vector.extract_strided_slice %88 {offsets = [0, 0], sizes = [9, 144], strides = [1, 1]} : vector<10x144xf32> to vector<9x144xf32>
    %90 = vector.extract_strided_slice %88 {offsets = [1, 0], sizes = [9, 144], strides = [1, 1]} : vector<10x144xf32> to vector<9x144xf32>
    %91 = arith.maximumf %89, %90 : vector<9x144xf32>
    %c0_51 = arith.constant 0 : index
    %c0_52 = arith.constant 0 : index
    %92 = vector.load %arg8[%c0_51, %c0_52] : memref<5x9xbf16, #tpu.memory_space<vmem>>, vector<5x9xbf16>
    %93 = arith.truncf %91 : vector<9x144xf32> to vector<9x144xbf16>
    %cst_53 = arith.constant dense<0.000000e+00> : vector<5x144xf32>
    %94 = tpu.matmul %92, %93, %cst_53 {dimension_numbers = #tpu.dot_dimension_numbers<[1], [0], [0], [1], [0, 0, 1, 1], [], []>} : vector<5x9xbf16>, vector<9x144xbf16>, vector<5x144xf32> -> vector<5x144xf32>
    %c0_54 = arith.constant 0 : index
    %c0_55 = arith.constant 0 : index
    %95 = vector.load %arg9[%c0_54, %c0_55] : memref<144x80xbf16, #tpu.memory_space<vmem>>, vector<144x80xbf16>
    %96 = arith.truncf %94 : vector<5x144xf32> to vector<5x144xbf16>
    %cst_56 = arith.constant dense<0.000000e+00> : vector<5x80xf32>
    %97 = tpu.matmul %96, %95, %cst_56 {dimension_numbers = #tpu.dot_dimension_numbers<[1], [0], [0], [1], [0, 0, 1, 1], [], []>} : vector<5x144xbf16>, vector<144x80xbf16>, vector<5x80xf32> -> vector<5x80xf32>
    %c0_57 = arith.constant 0 : index
    %c0_58 = arith.constant 0 : index
    %c0_59 = arith.constant 0 : index
    %98 = vector.load %arg10[%c0_57, %c0_58, %c0_59] : memref<1x5x80xf32, #tpu.memory_space<vmem>>, vector<1x5x80xf32>
    %99 = vector.shape_cast %98 : vector<1x5x80xf32> to vector<5x80xf32>
    %100 = vector.shape_cast %97 : vector<5x80xf32> to vector<1x5x80xf32>
    tpu.vector_store %arg10[%c0_57, %c0_58, %c0_59], %100 {strides = array<i32>} : memref<1x5x80xf32, #tpu.memory_space<vmem>>, vector<1x5x80xf32>,
    return
  }
  func.func @transform_0(%arg0: i32) -> (i32, i32, i32) {
    %c0_i32 = arith.constant 0 : i32
    %c0_i32_0 = arith.constant 0 : i32
    %c0_i32_1 = arith.constant 0 : i32
    return %arg0, %c0_i32, %c0_i32_0 : i32, i32, i32
  }
  func.func @transform_1(%arg0: i32) -> (i32, i32, i32) {
    %c0_i32 = arith.constant 0 : i32
    %c0_i32_0 = arith.constant 0 : i32
    %c0_i32_1 = arith.constant 0 : i32
    %c0_i32_2 = arith.constant 0 : i32
    return %c0_i32, %c0_i32_0, %c0_i32_1 : i32, i32, i32
  }
  func.func @transform_2(%arg0: i32) -> (i32, i32) {
    %c0_i32 = arith.constant 0 : i32
    %c0_i32_0 = arith.constant 0 : i32
    %c0_i32_1 = arith.constant 0 : i32
    return %c0_i32, %c0_i32_0 : i32, i32
  }
  func.func @transform_3(%arg0: i32) -> (i32, i32) {
    %c0_i32 = arith.constant 0 : i32
    %c0_i32_0 = arith.constant 0 : i32
    %c0_i32_1 = arith.constant 0 : i32
    return %c0_i32, %c0_i32_0 : i32, i32
  }
  func.func @transform_4(%arg0: i32) -> (i32, i32) {
    %c0_i32 = arith.constant 0 : i32
    %c0_i32_0 = arith.constant 0 : i32
    %c0_i32_1 = arith.constant 0 : i32
    return %c0_i32, %c0_i32_0 : i32, i32
  }
  func.func @transform_5(%arg0: i32) -> (i32, i32, i32) {
    %c0_i32 = arith.constant 0 : i32
    %c0_i32_0 = arith.constant 0 : i32
    %c0_i32_1 = arith.constant 0 : i32
    %c0_i32_2 = arith.constant 0 : i32
    return %c0_i32, %c0_i32_0, %c0_i32_1 : i32, i32, i32
  }
  func.func @transform_6(%arg0: i32) -> (i32, i32) {
    %c0_i32 = arith.constant 0 : i32
    %c0_i32_0 = arith.constant 0 : i32
    %c0_i32_1 = arith.constant 0 : i32
    return %c0_i32, %c0_i32_0 : i32, i32
  }
  func.func @transform_7(%arg0: i32) -> (i32, i32) {
    %c0_i32 = arith.constant 0 : i32
    %c0_i32_0 = arith.constant 0 : i32
    %c0_i32_1 = arith.constant 0 : i32
    return %c0_i32, %c0_i32_0 : i32, i32
  }
  func.func @transform_8(%arg0: i32) -> (i32, i32) {
    %c0_i32 = arith.constant 0 : i32
    %c0_i32_0 = arith.constant 0 : i32
    %c0_i32_1 = arith.constant 0 : i32
    return %c0_i32, %c0_i32_0 : i32, i32
  }
  func.func @transform_9(%arg0: i32) -> (i32, i32, i32) {
    %c0_i32 = arith.constant 0 : i32
    %c0_i32_0 = arith.constant 0 : i32
    %c0_i32_1 = arith.constant 0 : i32
    return %arg0, %c0_i32, %c0_i32_0 : i32, i32, i32
  }
}

module attributes {stable_mosaic.version = 11 : i64} {
  func.func @_mlp_kernel(%arg0: memref<2x400xf32, #tpu.memory_space<vmem>>, %arg1: memref<400x120xbf16, #tpu.memory_space<vmem>>, %arg2: memref<1x120xf32, #tpu.memory_space<vmem>>, %arg3: memref<120x84xbf16, #tpu.memory_space<vmem>>, %arg4: memref<1x84xf32, #tpu.memory_space<vmem>>, %arg5: memref<84x10xbf16, #tpu.memory_space<vmem>>, %arg6: memref<1x10xf32, #tpu.memory_space<vmem>>, %arg7: memref<2x10xf32, #tpu.memory_space<vmem>>) attributes {dimension_semantics = [], scalar_prefetch = 0 : i64, scratch_operands = 0 : i64, tpu.core_type = #tpu.core_type<tc>} {
    %c0 = arith.constant 0 : index
    %c0_0 = arith.constant 0 : index
    %0 = vector.load %arg0[%c0, %c0_0] : memref<2x400xf32, #tpu.memory_space<vmem>>, vector<2x400xf32>
    %c0_1 = arith.constant 0 : index
    %c0_2 = arith.constant 0 : index
    %1 = vector.load %arg1[%c0_1, %c0_2] : memref<400x120xbf16, #tpu.memory_space<vmem>>, vector<400x120xbf16>
    %2 = arith.truncf %0 : vector<2x400xf32> to vector<2x400xbf16>
    %cst = arith.constant dense<0.000000e+00> : vector<2x120xf32>
    %3 = tpu.matmul %2, %1, %cst {dimension_numbers = #tpu.dot_dimension_numbers<[1], [0], [0], [1], [0, 0, 1, 1], [], []>} : vector<2x400xbf16>, vector<400x120xbf16>, vector<2x120xf32> -> vector<2x120xf32>
    %c0_3 = arith.constant 0 : index
    %c0_4 = arith.constant 0 : index
    %4 = vector.load %arg2[%c0_3, %c0_4] : memref<1x120xf32, #tpu.memory_space<vmem>>, vector<1x120xf32>
    %5 = vector.broadcast %4 : vector<1x120xf32> to vector<2x120xf32>
    %6 = arith.addf %3, %5 : vector<2x120xf32>
    %cst_5 = arith.constant 0.000000e+00 : f32
    %7 = vector.broadcast %cst_5 : f32 to vector<2x120xf32>
    %8 = arith.maximumf %6, %7 : vector<2x120xf32>
    %c0_6 = arith.constant 0 : index
    %c0_7 = arith.constant 0 : index
    %9 = vector.load %arg3[%c0_6, %c0_7] : memref<120x84xbf16, #tpu.memory_space<vmem>>, vector<120x84xbf16>
    %10 = arith.truncf %8 : vector<2x120xf32> to vector<2x120xbf16>
    %cst_8 = arith.constant dense<0.000000e+00> : vector<2x84xf32>
    %11 = tpu.matmul %10, %9, %cst_8 {dimension_numbers = #tpu.dot_dimension_numbers<[1], [0], [0], [1], [0, 0, 1, 1], [], []>} : vector<2x120xbf16>, vector<120x84xbf16>, vector<2x84xf32> -> vector<2x84xf32>
    %c0_9 = arith.constant 0 : index
    %c0_10 = arith.constant 0 : index
    %12 = vector.load %arg4[%c0_9, %c0_10] : memref<1x84xf32, #tpu.memory_space<vmem>>, vector<1x84xf32>
    %13 = vector.broadcast %12 : vector<1x84xf32> to vector<2x84xf32>
    %14 = arith.addf %11, %13 : vector<2x84xf32>
    %cst_11 = arith.constant 0.000000e+00 : f32
    %15 = vector.broadcast %cst_11 : f32 to vector<2x84xf32>
    %16 = arith.maximumf %14, %15 : vector<2x84xf32>
    %c0_12 = arith.constant 0 : index
    %c0_13 = arith.constant 0 : index
    %17 = vector.load %arg5[%c0_12, %c0_13] : memref<84x10xbf16, #tpu.memory_space<vmem>>, vector<84x10xbf16>
    %18 = arith.truncf %16 : vector<2x84xf32> to vector<2x84xbf16>
    %cst_14 = arith.constant dense<0.000000e+00> : vector<2x10xf32>
    %19 = tpu.matmul %18, %17, %cst_14 {dimension_numbers = #tpu.dot_dimension_numbers<[1], [0], [0], [1], [0, 0, 1, 1], [], []>} : vector<2x84xbf16>, vector<84x10xbf16>, vector<2x10xf32> -> vector<2x10xf32>
    %c0_15 = arith.constant 0 : index
    %c0_16 = arith.constant 0 : index
    %20 = vector.load %arg6[%c0_15, %c0_16] : memref<1x10xf32, #tpu.memory_space<vmem>>, vector<1x10xf32>
    %21 = vector.broadcast %20 : vector<1x10xf32> to vector<2x10xf32>
    %22 = arith.addf %19, %21 : vector<2x10xf32>
    %c0_17 = arith.constant 0 : index
    %c0_18 = arith.constant 0 : index
    %23 = vector.load %arg7[%c0_17, %c0_18] : memref<2x10xf32, #tpu.memory_space<vmem>>, vector<2x10xf32>
    tpu.vector_store %arg7[%c0_17, %c0_18], %22 {strides = array<i32>} : memref<2x10xf32, #tpu.memory_space<vmem>>, vector<2x10xf32>,
    return
  }
}

</mosaic_0001>

<bundles_post_ra>
// kernel: simple_cifar_cnn_forward.3
= control target key start
LH: loop header
LB: loop body
LE: loop exit
PB: predicated region body
PF: predicated region fallthrough
CT: control target
= control target key end

     0   :  { %v768_v1 = vmov 0   ;;  %v84_v18 = vlaneseq  ;;  %v769_v26 = vmov 1983009808   ;;  %vm262_vm0 = vcmask 130048   ;;  %s980_s0 = inlined_call_operand.vmem [shape: f32[2,400], index: 0, kind: input, shape index: {}]   ;;  %s981_s1 = inlined_call_operand.vmem [shape: bf16[400,120], index: 1, kind: input, shape index: {}]   ;;  %s982_s2 = inlined_call_operand.vmem [shape: f32[1,120], index: 2, kind: input, shape index: {}]   ;;  %s983_s3 = inlined_call_operand.vmem [shape: bf16[120,84], index: 3, kind: input, shape index: {}]   ;;  %s984_s4 = inlined_call_operand.vmem [shape: f32[1,84], index: 4, kind: input, shape index: {}]   ;;  %s985_s5 = inlined_call_operand.vmem [shape: bf16[84,10], index: 5, kind: input, shape index: {}]   ;;  %s986_s6 = inlined_call_operand.vmem [shape: f32[1,10], index: 6, kind: input, shape index: {}]   ;;  %s987_s7 = inlined_call_operand.hbm [shape: f32[2,10], index: 7, kind: output, shape index: {}]  }
   0x1   :  { %v704_v0 = vld [vmem:[%s981_s1 + $0x40] sm:$0xff]   ;;  %306 = vmatprep.subr.bf16.mxu1 %v768_v1  ;;  %v707_v4 = vld [vmem:[%s981_s1 + $0x48] sm:$0xff]   ;;  %v710_v7 = vld [vmem:[%s981_s1 + $0x50] sm:$0xff]   ;;  %v82_v27 = vunpack.c.l.s4 %v769_v26  ;;  %v770_v38 = vmov 0.0  }
   0x2   :  { %v705_v2 = vld [vmem:[%s981_s1 + $0x80] sm:$0xff]   ;;  %625 = vmatprep.subr.bf16.mxu0 %v704_v0  ;;  %v708_v5 = vld [vmem:[%s981_s1 + $0x88] sm:$0xff]   ;;  %v711_v8 = vld [vmem:[%s981_s1 + $0x90] sm:$0xff]   ;;  %v85_v23 = vshrl.u32 %v84_v18, 7 }
   0x3   :  { %v706_v3 = vld [vmem:[%s981_s1] sm:$0xff]   ;;  %307 = vmatpush1.bf16.msra.mxu1 %v705_v2  ;;  %v709_v6 = vld [vmem:[%s981_s1 + $0x8] sm:$0xff]   ;;  %v712_v9 = vld [vmem:[%s981_s1 + $0x10] sm:$0xff]   ;;  %v83_v30 = vunpack.c.0.s8 %v82_v27 }
   0x4   :  { %626 = vmatpush3.bf16.msra.mxu0 %v706_v3  ;;  %308 = vmatprep.subr.bf16.mxu1 %v768_v1  ;;  %v713_v10 = vld [vmem:[%s981_s1 + $0x58] sm:$0xff]   ;;  %v716_v13 = vld [vmem:[%s981_s1 + $0x60] sm:$0xff]   ;;  %v719_v16 = vld [vmem:[%s981_s1 + $0x68] sm:$0xff]  }
   0x5   :  { %627 = vmatprep.subr.bf16.mxu0 %v707_v4  ;;  %v714_v11 = vld [vmem:[%s981_s1 + $0x98] sm:$0xff]   ;;  %v717_v14 = vld [vmem:[%s981_s1 + $0xa0] sm:$0xff]   ;;  %v720_v17 = vld [vmem:[%s981_s1 + $0xa8] sm:$0xff]   ;;  %v86_v32 = vsub.s32 %v83_v30, %v85_v23 }
   0x6   :  { %v715_v12 = vld [vmem:[%s981_s1 + $0x18] sm:$0xff]   ;;  %v718_v15 = vld [vmem:[%s981_s1 + $0x20] sm:$0xff]   ;;  %v721_v19 = vld [vmem:[%s981_s1 + $0x28] sm:$0xff]  }
   0x7   :  { %309 = vmatpush1.bf16.msra.mxu1 %v708_v5  ;;  %v722_v20 = vld [vmem:[%s981_s1 + $0x70] sm:$0xff]   ;;  %v725_v24 = vld [vmem:[%s981_s1 + $0x78] sm:$0xff]   ;;  %v28_v25 = vld [vmem:[%s980_s0] sm:$0xff] }
   0x8   :  { %628 = vmatpush3.bf16.msra.mxu0 %v709_v6  ;;  %310 = vmatprep.subr.bf16.mxu1 %v768_v1  ;;  %v723_v21 = vld [vmem:[%s981_s1 + $0xb0] sm:$0xff]   ;;  %v726_v28 = vld [vmem:[%s981_s1 + $0xb8] sm:$0xff]   ;;  %v80_v29 = vcombine.high %v28_v25, %v28_v25  ;;  %v729_v33 = vld [vmem:[%s981_s1 + $0xc0] sm:$0xff]   ;;  %v87_v34 = vrot.slane %v28_v25, %v86_v32 }
   0x9   :  { %629 = vmatprep.subr.bf16.mxu0 %v710_v7  ;;  %v724_v22 = vld [vmem:[%s981_s1 + $0x30] sm:$0xff]   ;;  %v727_v31 = vld [vmem:[%s981_s1 + $0x38] sm:$0xff]   ;;  %v730_v39 = vld [vmem:[%s983_s3] sm:$0xff]  }
   0xa   :  { %v94_v35 = vrot.slane %v80_v29, %v86_v32  ;;  %v95_v36 = vcombine.high %v87_v34, %v87_v34  ;;  %v101_v40 = vpack.c.bf16 %v87_v34, %v87_v34 }
   0xb   :  { %311 = vmatpush1.bf16.msra.mxu1 %v711_v8 }
   0xc   :  { %630 = vmatpush3.bf16.msra.mxu0 %v712_v9  ;;  %312 = vmatprep.subr.bf16.mxu1 %v768_v1  ;;  %v96_v37 = vcombine.high %v94_v35, %v94_v35  ;;  %v103_v41 = vpack.c.bf16 %v94_v35, %v94_v35  ;;  %v102_v42 = vpack.c.bf16 %v95_v36, %v95_v36 }
   0xd   :  { %631 = vmatprep.subr.bf16.mxu0 %v713_v10 }
   0xe   :  { %v104_v43 = vpack.c.bf16 %v96_v37, %v96_v37 }
   0xf   :  { %313 = vmatpush1.bf16.msra.mxu1 %v714_v11 }
  0x10   :  { %632 = vmatpush3.bf16.msra.mxu0 %v715_v12  ;;  %314 = vmatprep.subr.bf16.mxu1 %v768_v1 }
  0x11   :  { %633 = vmatprep.subr.bf16.mxu0 %v716_v13 }
  0x13   :  { %315 = vmatpush1.bf16.msra.mxu1 %v717_v14 }
  0x14   :  { %634 = vmatpush3.bf16.msra.mxu0 %v718_v15  ;;  %316 = vmatprep.subr.bf16.mxu1 %v768_v1 }
  0x15   :  { %635 = vmatprep.subr.bf16.mxu0 %v719_v16 }
  0x17   :  { %317 = vmatpush1.bf16.msra.mxu1 %v720_v17 }
  0x18   :  { %636 = vmatpush3.bf16.msra.mxu0 %v721_v19  ;;  %318 = vmatprep.subr.bf16.mxu1 %v768_v1 }
  0x19   :  { %637 = vmatprep.subr.bf16.mxu0 %v722_v20 }
  0x1b   :  { %319 = vmatpush1.bf16.msra.mxu1 %v723_v21 }
  0x1c   :  { %638 = vmatpush3.bf16.msra.mxu0 %v724_v22  ;;  %320 = vmatprep.subr.bf16.mxu1 %v768_v1 }
  0x1d   :  { %639 = vmatprep.subr.bf16.mxu0 %v725_v24 }
  0x1f   :  { %321 = vmatpush1.bf16.msra.mxu1 %v726_v28 }
  0x20   :  { %640 = vmatpush3.bf16.msra.mxu0 %v727_v31  ;;  %322 = vmatprep.subr.bf16.mxu1 %v768_v1 }
  0x21   :  { %663 = vmatprep.subr.bf16.mxu0 %v770_v38 }
  0x23   :  { %323 = vmatpush1.bf16.msra.mxu1 %v729_v33 }
  0x24   :  { %12 = vsyncpa [#allocation3], 0  ;;  %683 = vmatprep.subr.bf16.mxu1 %v770_v38  ;;  %298 = vmatprep.mubr.bf16.mxu0 %v102_v42  ;;  %v731_v44 = vld [vmem:[%s983_s3 + $0x8] sm:$0xff]   ;;  %v732_v45 = vld [vmem:[%s983_s3 + $0x10] sm:$0xff]   ;;  %vm419_vm1 = vcmask 1043456   ;;  %vm771_vm2 = vmmov 0  }
  0x25   :  { %606 = vmatprep.mubr.msk.bf16.mxu1 %vm262_vm0, %v104_v43  ;;  %299 = vmatmul.mubr.bf16.vlgmr.msra.gmra.mrb[0].mxu0 %v101_v40  ;;  %v733_v46 = vld [vmem:[%s983_s3 + $0x18] sm:$0xff]   ;;  %v734_v47 = vld [vmem:[%s983_s3 + $0x20] sm:$0xff]   ;;  %v735_v48 = vld [vmem:[%s983_s3 + $0x28] sm:$0xff]   ;;  %vm415_vm3 = vcmask 982016   ;;  %vm520_vm4 = vcmask 1041408   ;;  %vm516_vm5 = vcmask 687104  }
  0x26   :  { %339 = vmatmul.mubr.bf16.vlgmr.msra.gmra.mrb[0].mxu1 %v103_v41  ;;  %664 = vmatpush3.bf16.msra.mxu0 %v730_v39  ;;  %v736_v49 = vld [vmem:[%s983_s3 + $0x30] sm:$0xff]   ;;  %v737_v50 = vld [vmem:[%s983_s3 + $0x38] ss:$0 sps:$4 sm:$0xff]   ;;  %v738_v52 = vld [vmem:[%s985_s5] sm:$0xff]   ;;  %vm564_vm6 = vcmask 74752  }
  0x27   :  { %665 = vmatprep.subr.bf16.mxu0 %v770_v38  ;;  %v421_v51 = vsel %vm419_vm1, %v737_v50, 0  ;;  %679 = vmatprep.mubr.msk.bf16.mxu0 %vm771_vm2, %v770_v38  ;;  %v739_v53 = vld [vmem:[%s985_s5 + $0x8] sm:$0xff]   ;;  %v740_v54 = vld [vmem:[%s985_s5 + $0x10] sm:$0xff]   ;;  %v741_v55 = vld [vmem:[%s985_s5 + $0x18] sm:$0xff]  }
  0x28   :  { %695 = vmatprep.mubr.msk.bf16.mxu1 %vm771_vm2, %v770_v38  ;;  %684 = vmatpush3.bf16.msra.mxu1 %v738_v52  ;;  %v580_v59 = vld [vmem:[%s982_s2] ss:$0 sm:$0xff]  ;;  %v743_v7 = vld [vmem:[%s985_s5 + $0x28] ss:$0 sps:$4 sm:$0x33]  }
  0x29   :  { %685 = vmatprep.subr.bf16.mxu1 %v770_v38  ;;  %v742_v6 = vld [vmem:[%s985_s5 + $0x20] sm:$0xff]   ;;  %v522_v8 = vsel %vm520_vm4, %v743_v7, 0  ;;  %s772_s5 = smov [#allocation2]  }
  0x2a   :  { %666 = vmatpush3.bf16.msra.mxu0 %v731_v44  ;;  %v607_v9 = vld [vmem:[%s984_s4] ss:$0 sm:$0xff]  ;;  %s572_s12 = sshll.u32 %s772_s5, 4  ;;  %s573_s12 = int_to_ptr.vmem [resolvable:$true] %s572_s12 }
  0x2b   :  { %667 = vmatprep.subr.bf16.mxu0 %v770_v38  ;;  %v617_v17 = vld [vmem:[%s986_s6] ss:$0 sm:$0xff]  ;;  %s744_s4 = scalar_lea.vmem %s573_s12, 32  ;;  %p749_p1 = scmp.lt.s32.totalorder %s573_s12, %s573_s12 }
  0x2c   :  { %686 = vmatpush3.bf16.msra.mxu1 %v739_v53  ;;  %p745_p0 = scmp.ne.s32.totalorder %s573_s12, %s744_s4  ;;  %p750_p2 = scmp.lt.s32.totalorder %s744_s4, %s744_s4 }
  0x2d   :  { %687 = vmatprep.subr.bf16.mxu1 %v770_v38 }
  0x2e   :  { %668 = vmatpush3.bf16.msra.mxu0 %v732_v45  ;;  %p751_p3 = por %p750_p2, %p749_p1 }
  0x2f   :  { %669 = vmatprep.subr.bf16.mxu0 %v770_v38 }
  0x30   :  { %688 = vmatpush3.bf16.msra.mxu1 %v740_v54  ;;  %p752_p4 = pnand %p751_p3, %p745_p0 }
  0x31   :  { %689 = vmatprep.subr.bf16.mxu1 %v770_v38 }
  0x32   :  { %670 = vmatpush3.bf16.msra.mxu0 %v733_v46 }
  0x33   :  { %671 = vmatprep.subr.bf16.mxu0 %v770_v38 }
  0x34   :  { %690 = vmatpush3.bf16.msra.mxu1 %v741_v55 }
  0x35   :  { %691 = vmatprep.subr.bf16.mxu1 %v770_v38 }
  0x36   :  { %672 = vmatpush3.bf16.msra.mxu0 %v734_v47 }
  0x37   :  { %673 = vmatprep.subr.bf16.mxu0 %v770_v38 }
  0x38   :  { %692 = vmatpush3.bf16.msra.mxu1 %v742_v6 }
  0x39   :  { %693 = vmatprep.subr.bf16.mxu1 %v770_v38 }
  0x3a   :  { %674 = vmatpush3.bf16.msra.mxu0 %v735_v48 }
  0x3b   :  { %675 = vmatprep.subr.bf16.mxu0 %v770_v38 }
  0x3c   :  { %694 = vmatpush3.bf16.msra.mxu1 %v522_v8 }
  0x3e   :  { %676 = vmatpush3.bf16.msra.mxu0 %v736_v49 }
  0x3f   :  { %677 = vmatprep.subr.bf16.mxu0 %v770_v38 }
  0x42   :  { %678 = vmatpush3.bf16.msra.mxu0 %v421_v51 }
  0xf8   :  { %v641_v56 = vpop.f32.mrb[0].mxu0 }
  0xf9   :  { %v340_v57 = vpop.f32.mrb[0].mxu1  ;;  %v642_v58 = vpop.f32.mrb[1].mxu0 }
  0xfa   :  { %v342_v60 = vpop.f32.mrb[1].mxu1  ;;  %v643_v61 = vadd.f32 %v642_v58, %v641_v56  ;;  %v644_v62 = vpop.f32.mrb[2].mxu0 }
  0xfb   :  { %v343_v63 = vpop.f32.mrb[2].mxu1  ;;  %v645_v0 = vpop.f32.mrb[3].mxu0 }
  0xfc   :  { %v344_v1 = vpop.f32.mrb[3].mxu1  ;;  %v301_v2 = vadd.f32 %v643_v61, %v580_v59 }
  0xfe   :  { %v341_v3 = vadd.f32 %v340_v57, %v301_v2 }
 0x100   :  { %v346_v4 = vmax.f32 %v341_v3, 0.0 }
 0x102   :  { %v362_v5 = vpack.c.bf16 %v346_v4, %v346_v4 }
 0x104   :  { %680 = vmatmul.mubr.msk.bf16.vlgmr.msra.gmra.mrb[4].mxu0 %vm415_vm3, %v362_v5 }
 0x1d7   :  { %v457_v10 = vpop.f32.mrb[4].mxu0 }
 0x1d8   :  { %v458_v11 = vadd.f32 %v607_v9, %v457_v10  ;;  %v681_v12 = vpop.f32.mrb[5].mxu0 }
 0x1d9   :  { %v460_v13 = vpop.f32.mrb[6].mxu0 }
 0x1da   :  { %v463_v14 = vmax.f32 %v458_v11, 0.0  ;;  %v682_v15 = vpop.f32.mrb[7].mxu0 }
 0x1dc   :  { %v475_v16 = vpack.c.bf16 %v463_v14, %v463_v14 }
 0x1de   :  { %696 = vmatmul.mubr.msk.bf16.vlgmr.msra.gmra.mrb[4].mxu1 %vm516_vm5, %v475_v16 }
 0x2b1   :  { %v558_v18 = vpop.f32.mrb[4].mxu1 }
 0x2b2   :  { %v559_v19 = vadd.f32 %v617_v17, %v558_v18  ;;  %v697_v20 = vpop.f32.mrb[5].mxu1 }
 0x2b3   :  { %v561_v21 = vpop.f32.mrb[6].mxu1 }
 0x2b4   :  { %v698_v22 = vpop.f32.mrb[7].mxu1  ;;  %565 = vst.msk [vmem:[#allocation2] sm:$0x3] %vm564_vm6, %v559_v19 }
 0x2b5   :  { %755 = shalt.err (!%p752_p4)
}
 0x2b6   :  { %s756_s6 = scalar_lea.hbm %s987_s7, 32 }
 0x2b7   :  { %p757_p5 = scmp.ne.s32.totalorder %s987_s7, %s756_s6  ;;  %p760_p6 = scmp.lt.u32.totalorder %s756_s6, %s987_s7 }
 0x2b9   :  { %p762_p7 = pnand %p760_p6, %p757_p5 }
 0x2bb   :  { %765 = shalt.err (!%p762_p7)
}
 0x2bc   :  { %575 = dma.vmem_to_hbm [thread:$0]  %s573_s12, 32, %s987_s7, [#allocation3]  }
 0x2bd   :  { %766 = dma.done.wait [#allocation3], 32  }
 0x2be   :  { %767 = vsyncadd [#allocation3], 4294967264 }
 0x2bf   :  { %579 = vsyncpa [#allocation3], 1 }

// kernel: simple_cifar_cnn_forward.2
= control target key start
LH: loop header
LB: loop body
LE: loop exit
PB: predicated region body
PF: predicated region fallthrough
CT: control target
= control target key end

     0   :  { %s2897_s30 = smov 0   ;;  %s3472_s0 = inlined_call_operand.vmem [shape: f32[2,32,96], index: 0, kind: input, shape index: {}]   ;;  %s3473_s1 = inlined_call_operand.vmem [shape: bf16[5,96,168], index: 1, kind: input, shape index: {}]   ;;  %s3474_s2 = inlined_call_operand.vmem [shape: f32[1,168], index: 2, kind: input, shape index: {}]   ;;  %s3475_s3 = inlined_call_operand.vmem [shape: bf16[14,27], index: 3, kind: input, shape index: {}]   ;;  %s3476_s4 = inlined_call_operand.vmem [shape: bf16[162,84], index: 4, kind: input, shape index: {}]   ;;  %s3477_s5 = inlined_call_operand.vmem [shape: bf16[5,84,160], index: 5, kind: input, shape index: {}]   ;;  %s3478_s6 = inlined_call_operand.vmem [shape: f32[1,160], index: 6, kind: input, shape index: {}]   ;;  %s3479_s7 = inlined_call_operand.vmem [shape: bf16[5,9], index: 7, kind: input, shape index: {}]   ;;  %s3480_s8 = inlined_call_operand.vmem [shape: bf16[144,80], index: 8, kind: input, shape index: {}]   ;;  %s3481_s9 = inlined_call_operand.vmem [shape: f32[2,5,80], index: 9, kind: output, shape index: {}]  }
   0x1 LB: > { %s2281_s10 = sadd.s32 4294967295, %s2841_s30   ;;  %p2285_p0 = scmp.ge.s32.totalorder %s2841_s30, 1  ;;  %s2841_s30 = sphi %s2897_s30, %s19_s30  }
   0x2   : > { %p287_p1 = scmp.lt.s32.totalorder %s2841_s30, 3 }
   0x4   : > { %p288_p2 = pnand %p2285_p0, %p287_p1 }
   0x5   : > { %v2639_v0 = vld [vmem:[%s3473_s1 + $0x64] ss:$8 sps:$4 sm:$0xff] (!%p288_p2)   ;;  %p322_p3 = scmp.lt.s32.totalorder (!%p288_p2), %s2281_s10, 1  ;;  %v2641_v1 = vld [vmem:[%s3473_s1 + $0x60] ss:$8 sps:$4 sm:$0xff] (!%p288_p2)   ;;  %v2843_v2 = vmov (!%p288_p2), 0  }
   0x6   : > { %291 = sbr.rel (%p288_p2) target bundleno = 1810 (0x712), region = 56  ;;  %478 = vmatprep.mubr.bf16.mxu0 (!%p288_p2), %v2843_v2  ;;  %1223 = vmatprep.mubr.bf16.mxu1 (!%p288_p2), %v2843_v2  ;;  %v2642_v3 = vld [vmem:[%s3473_s1 + $0x74] ss:$8 sps:$4 sm:$0xff] (!%p288_p2)   ;;  %v2644_v4 = vld [vmem:[%s3473_s1 + $0x70] ss:$8 sps:$4 sm:$0xff] (!%p288_p2)   ;;  %vm923_vm1 = vcmask (!%p288_p2), 1045504  }
   0x7   : > { %446 = vmatprep.subr.bf16.mxu0 (!%p288_p2), %v2639_v0  ;;  %v2645_v5 = vld [vmem:[%s3473_s1 + $0x84] ss:$8 sps:$4 sm:$0xff] (!%p288_p2)   ;;  %v2647_v6 = vld [vmem:[%s3473_s1 + $0x80] ss:$8 sps:$4 sm:$0xff] (!%p288_p2)   ;;  %v2648_v7 = vld [vmem:[%s3473_s1 + $0x94] ss:$8 sps:$4 sm:$0xff] (!%p288_p2)  }
   0x8   : > { %447 = vmatpush1.bf16.msra.mxu0 (!%p288_p2), %v2641_v1  ;;  %v2650_v13 = vld [vmem:[%s3473_s1 + $0x90] ss:$8 sps:$4 sm:$0xff] (!%p288_p2)   ;;  %v2651_v15 = vld [vmem:[%s3473_s1 + $0xa4] ss:$8 sps:$4 sm:$0xff] (!%p288_p2)   ;;  %v2653_v22 = vld [vmem:[%s3473_s1 + $0xa0] ss:$8 sps:$4 sm:$0xff] (!%p288_p2)  }
   0x9   : > { %448 = vmatprep.subr.bf16.mxu0 (!%p288_p2), %v2642_v3  ;;  %v2654_v26 = vld [vmem:[%s3473_s1 + $0xb4] ss:$8 sps:$4 sm:$0xff] (!%p288_p2)   ;;  %vm775_vm0 = vsmask.f32 (!%p288_p2), 6400  ;;  %v2656_v31 = vld [vmem:[%s3473_s1 + $0xb0] ss:$8 sps:$4 sm:$0xff] (!%p288_p2)  }
   0xa   : > { %v2659_v35 = vld [vmem:[%s3473_s1 + $0x4] ss:$8 sps:$4 sm:$0xff] (!%p288_p2)   ;;  %vm363_vm2 = vsmask.f32 (!%p288_p2), 7424  ;;  %v2657_v37 = vld [vmem:[%s3473_s1] ss:$8 sps:$4 sm:$0xff] (!%p288_p2)  }
   0xb   : > { %vm439_vm3 = vcmask (!%p288_p2), 785408   ;;  %v2662_v39 = vld [vmem:[%s3473_s1 + $0x14] ss:$8 sps:$4 sm:$0xff] (!%p288_p2)   ;;  %v2660_v40 = vld [vmem:[%s3473_s1 + $0x10] ss:$8 sps:$4 sm:$0xff] (!%p288_p2)   ;;  %vm631_vm4 = vcmask (!%p288_p2), 1046528  }
   0xc   : > { %449 = vmatpush1.bf16.msra.mxu0 (!%p288_p2), %v2644_v4  ;;  %v2665_v41 = vld [vmem:[%s3473_s1 + $0x24] ss:$8 sps:$4 sm:$0xff] (!%p288_p2)   ;;  %v2663_v43 = vld [vmem:[%s3473_s1 + $0x20] ss:$8 sps:$4 sm:$0xff] (!%p288_p2)   ;;  %v2668_v44 = vld [vmem:[%s3473_s1 + $0x34] ss:$8 sps:$4 sm:$0xff] (!%p288_p2)  }
   0xd   : > { %s3483_s10 = smov (!%p322_p3, %s2281_s10), 1  ;;  %450 = vmatprep.subr.bf16.mxu0 %v2645_v5  ;;  %v2666_v45 = vld [vmem:[%s3473_s1 + $0x30] ss:$8 sps:$4 sm:$0xff]   ;;  %v2671_v46 = vld [vmem:[%s3473_s1 + $0x44] ss:$8 sps:$4 sm:$0xff]   ;;  %s2844_s23 = smov 122  }
   0xe   : > { %s2548_s21 = sshll.u32 %s3483_s10, 5  ;;  %v2669_v47 = vld [vmem:[%s3473_s1 + $0x40] ss:$8 sps:$4 sm:$0xff]   ;;  %v2674_v48 = vld [vmem:[%s3473_s1 + $0x54] ss:$8 sps:$4 sm:$0xff]   ;;  %vm1106_vm5 = vcmask 998400  }
   0xf   : > { %s326_s24 = scalar_lea.vmem %s3472_s0, %s2548_s21  ;;  %v2672_v49 = vld [vmem:[%s3473_s1 + $0x50] ss:$8 sps:$4 sm:$0xff]   ;;  %v2677_v50 = vld [vmem:[%s3473_s1 + $0xc4] ss:$8 sps:$4 sm:$0xff]   ;;  %v2675_v51 = vld [vmem:[%s3473_s1 + $0xc0] ss:$8 sps:$4 sm:$0xff]  }
  0x10   : > { %v332_v8 = vld [vmem:[%s326_s24] sm:$0xff]  ;;  %v333_v9 = vld [vmem:[%s326_s24 + $0x8] sm:$0xff]  ;;  %v334_v10 = vld [vmem:[%s326_s24 + $0x10] sm:$0xff]  ;;  %451 = vmatpush1.bf16.msra.mxu0 %v2647_v6  ;;  %vm1181_vm6 = vcmask 1044480   ;;  %vm1177_vm7 = vcmask 220160   ;;  %vm1324_vm8 = vcmask 1040384  }
  0x11   : > { %v335_v11 = vld [vmem:[%s326_s24 + $0x18] sm:$0xff]  ;;  %v2934_v12 = vpack.c.bf16 %v333_v9, %v332_v8  ;;  %452 = vmatprep.subr.bf16.mxu0 %v2648_v7  ;;  %v2683_v54 = vld [vmem:[%s3473_s1 + $0xe4] ss:$8 sps:$4 sm:$0xff]   ;;  %v2681_v55 = vld [vmem:[%s3473_s1 + $0xe0] ss:$8 sps:$4 sm:$0xff]   ;;  %vm1320_vm9 = vcmask 277504  }
  0x12   : > { %v2939_v14 = vpack.c.bf16 %v335_v11, %v334_v10  ;;  %v2680_v52 = vld [vmem:[%s3473_s1 + $0xd4] ss:$8 sps:$4 sm:$0xff]   ;;  %v2678_v53 = vld [vmem:[%s3473_s1 + $0xd0] ss:$8 sps:$4 sm:$0xff]   ;;  %v2689_v58 = vld [vmem:[%s3473_s1 + $0x104] ss:$8 sps:$4 sm:$0xff]  }
  0x13   : > { %v365_v16 = vshrl.u32 %v2934_v12, 16  ;;  %v367_v17 = vshll.u32 %v2934_v12, 16  ;;  %v924_v29 = vrot.slane %v2934_v12, 2  ;;  %v2686_v56 = vld [vmem:[%s3473_s1 + $0xf4] ss:$8 sps:$4 sm:$0xff]   ;;  %v632_v62 = vrot.slane %v2934_v12, 1 }
  0x14   : > { %v372_v18 = vshll.u32 %v2939_v14, 16  ;;  %v376_v19 = vshrl.u32 %v2939_v14, 16  ;;  %453 = vmatpush1.bf16.msra.mxu0 %v2650_v13  ;;  %v925_v30 = vrot.slane %v2939_v14, 2  ;;  %v2684_v57 = vld [vmem:[%s3473_s1 + $0xf0] ss:$8 sps:$4 sm:$0xff]   ;;  %v633_v0 = vrot.slane %v2939_v14, 1 }
  0x15   : > { %v776_v20 = vrot.slane %v365_v16, 1  ;;  %v777_v21 = vrot.slane %v367_v17, 2  ;;  %v369_v23 = vrot.slane %v367_v17, 1  ;;  %454 = vmatprep.subr.bf16.mxu0 %v2651_v15  ;;  %v2687_v59 = vld [vmem:[%s3473_s1 + $0x100] ss:$8 sps:$4 sm:$0xff]   ;;  %vm1459_vm10 = vcmask 1041408  }
  0x16   : > { %v780_v24 = vrot.slane %v372_v18, 2  ;;  %v779_v25 = vrot.slane %v376_v19, 1  ;;  %v374_v33 = vrot.slane %v372_v18, 1  ;;  %v2970_v36 = vsel %vm923_vm1, %v924_v29, %v925_v30  ;;  %v2692_v60 = vld [vmem:[%s3473_s1 + $0x114] ss:$8 sps:$4 sm:$0xff]   ;;  %s2846_s27 = smov 112  }
  0x17   : > { %v778_v27 = vor.u32 %v777_v21, %v776_v20  ;;  %v370_v32 = vor.u32 %v369_v23, %v365_v16  ;;  %v2690_v61 = vld [vmem:[%s3473_s1 + $0x110] ss:$8 sps:$4 sm:$0xff]   ;;  %v2695_v63 = vld [vmem:[%s3473_s1 + $0x124] ss:$8 sps:$4 sm:$0xff]   ;;  %v2693_v1 = vld [vmem:[%s3473_s1 + $0x120] ss:$8 sps:$4 sm:$0xff]   ;;  %v634_v3 = vsel %vm631_vm4, %v632_v62, %v633_v0 }
  0x18   : > { %v2954_v28 = vor.u32 %v780_v24, %v779_v25  ;;  %455 = vmatpush1.bf16.msra.mxu0 %v2653_v22  ;;  %v378_v42 = vor.u32 %v376_v19, %v374_v33  ;;  %v2698_v4 = vld [vmem:[%s3473_s1 + $0x134] ss:$8 sps:$4 sm:$0xff]   ;;  %v2696_v5 = vld [vmem:[%s3473_s1 + $0x130] ss:$8 sps:$4 sm:$0xff]   ;;  %v2701_v6 = vld [vmem:[%s3473_s1 + $0x144] ss:$8 sps:$4 sm:$0xff]  }
  0x19   : > { %456 = vmatprep.subr.bf16.mxu0 %v2654_v26  ;;  %v375_v38 = vsel %vm363_vm2, %v370_v32, %v374_v33  ;;  %v2699_v7 = vld [vmem:[%s3473_s1 + $0x140] ss:$8 sps:$4 sm:$0xff]   ;;  %v2704_v8 = vld [vmem:[%s3473_s1 + $0x154] ss:$8 sps:$4 sm:$0xff]   ;;  %v2702_v9 = vld [vmem:[%s3473_s1 + $0x150] ss:$8 sps:$4 sm:$0xff]  }
  0x1a   : > { %v2962_v34 = vsel %vm775_vm0, %v778_v27, %v2954_v28  ;;  %v2707_v10 = vld [vmem:[%s3473_s1 + $0x164] ss:$8 sps:$4 sm:$0xff]   ;;  %v2705_v11 = vld [vmem:[%s3473_s1 + $0x160] ss:$8 sps:$4 sm:$0xff]   ;;  %v2708_v13 = vld [vmem:[%s3473_s1 + $0x170] ss:$8 sps:$4 sm:$0xff]   ;;  %v1056_v27 = vlaneseq }
  0x1b   : > { %v2713_v15 = vld [vmem:[%s3473_s1 + $0x184] ss:$8 sps:$4 sm:$0xff]   ;;  %v2711_v16 = vld [vmem:[%s3473_s1 + $0x180] ss:$8 sps:$4 sm:$0xff]   ;;  %v2716_v17 = vld [vmem:[%s3473_s1 + $0x194] ss:$8 sps:$4 sm:$0xff]  }
  0x1c   : > { %457 = vmatpush1.bf16.msra.mxu0 %v2656_v31  ;;  %v2714_v18 = vld [vmem:[%s3473_s1 + $0x190] ss:$8 sps:$4 sm:$0xff]   ;;  %v2719_v19 = vld [vmem:[%s3473_s1 + $0x1a4] ss:$8 sps:$4 sm:$0xff]   ;;  %v2717_v20 = vld [vmem:[%s3473_s1 + $0x1a0] ss:$8 sps:$4 sm:$0xff]  }
  0x1d   : > { %563 = vmatprep.subr.bf16.mxu0 %v2659_v35  ;;  %v2722_v21 = vld [vmem:[%s3473_s1 + $0x1b4] ss:$8 sps:$4 sm:$0xff]   ;;  %v2720_v22 = vld [vmem:[%s3473_s1 + $0x1b0] ss:$8 sps:$4 sm:$0xff]   ;;  %v2725_v23 = vld [vmem:[%s3473_s1 + $0x1c4] ss:$8 sps:$4 sm:$0xff]  }
  0x1e   : > { %v2723_v24 = vld [vmem:[%s3473_s1 + $0x1c0] ss:$8 sps:$4 sm:$0xff]   ;;  %v2728_v25 = vld [vmem:[%s3473_s1 + $0x1d4] ss:$8 sps:$4 sm:$0xff]   ;;  %v2726_v26 = vld [vmem:[%s3473_s1 + $0x1d0] ss:$8 sps:$4 sm:$0xff]  }
  0x1f   : > { %2313 = vmatmul.mubr.msk.bf16.vlgmr.msra.gmra.mrb[0].mxu0 %vm439_vm3, %v375_v38  ;;  %v1054_v31 = vld [vmem:[%s3474_s2] sm:$0x3]  ;;  %vm1455_vm11 = vcmask 687104   ;;  %vm2022_vm12 = vcmask 916480   ;;  %vm2058_vm13 = vcmask 1043456   ;;  %vm2054_vm14 = vcmask 72704  }
  0x20   : > { %564 = vmatpush1.bf16.msra.mxu0 %v2657_v37  ;;  %488 = vmatprep.mubr.bf16.mxu0 %v2843_v2  ;;  %vm2182_vm15 = vcmask 130048   ;;  %s2288_s29 = sshll.u32 %s3483_s10, 3  ;;  %vm2226_vm0 = vcmask 651264  }
  0x21   : > { %565 = vmatprep.subr.bf16.mxu0 %v2662_v39  ;;  %s330_s13 = scalar_lea.vmem %s3481_s9, %s2288_s29 }
  0x24   : > { %566 = vmatpush1.bf16.msra.mxu0 %v2660_v40 }
  0x25   : > { %567 = vmatprep.subr.bf16.mxu0 %v2665_v41 }
  0x27   : > { %2314 = vmatmul.mubr.msk.bf16.gmra.mrb[4].mxu0 %vm439_vm3, %v378_v42 }
  0x28   : > { %568 = vmatpush1.bf16.msra.mxu0 %v2663_v43  ;;  %595 = vmatprep.mubr.bf16.mxu0 %v2843_v2 }
  0x29   : > { %569 = vmatprep.subr.bf16.mxu0 %v2668_v44 }
  0x2c   : > { %570 = vmatpush1.bf16.msra.mxu0 %v2666_v45 }
  0x2d   : > { %571 = vmatprep.subr.bf16.mxu0 %v2671_v46 }
  0x30   : > { %572 = vmatpush1.bf16.msra.mxu0 %v2669_v47 }
  0x31   : > { %573 = vmatprep.subr.bf16.mxu0 %v2674_v48 }
  0x34   : > { %574 = vmatpush1.bf16.msra.mxu0 %v2672_v49 }
  0x35   : > { %701 = vmatprep.subr.bf16.mxu0 %v2677_v50 }
  0x37   : > { %2327 = vmatmul.mubr.msk.bf16.vlgmr.msra.gmra.mrb[0].mxu0 %vm439_vm3, %v2934_v12  ;;  %v2710_v12 = vld [vmem:[%s3473_s1 + $0x174] ss:$8 sps:$4 sm:$0xff]  }
  0x38   : > { %702 = vmatpush1.bf16.msra.mxu0 %v2675_v51  ;;  %605 = vmatprep.mubr.bf16.mxu0 %v2843_v2 }
  0x39   : > { %703 = vmatprep.subr.bf16.mxu0 %v2680_v52 }
  0x3c   : > { %704 = vmatpush1.bf16.msra.mxu0 %v2678_v53 }
  0x3d   : > { %705 = vmatprep.subr.bf16.mxu0 %v2683_v54 }
  0x3f   : > { %2328 = vmatmul.mubr.msk.bf16.gmra.mrb[4].mxu0 %vm439_vm3, %v2939_v14 }
  0x40   : > { %706 = vmatpush1.bf16.msra.mxu0 %v2681_v55  ;;  %733 = vmatprep.mubr.bf16.mxu0 %v2843_v2 }
  0x41   : > { %707 = vmatprep.subr.bf16.mxu0 %v2686_v56 }
  0x44   : > { %708 = vmatpush1.bf16.msra.mxu0 %v2684_v57 }
  0x45   : > { %709 = vmatprep.subr.bf16.mxu0 %v2689_v58 }
  0x48   : > { %710 = vmatpush1.bf16.msra.mxu0 %v2687_v59 }
  0x49   : > { %711 = vmatprep.subr.bf16.mxu0 %v2692_v60 }
  0x4c   : > { %712 = vmatpush1.bf16.msra.mxu0 %v2690_v61 }
  0x4d   : > { %849 = vmatprep.subr.bf16.mxu0 %v2695_v63 }
  0x4f   : > { %2353 = vmatmul.mubr.msk.bf16.vlgmr.msra.gmra.mrb[0].mxu0 %vm439_vm3, %v634_v3 }
  0x50   : > { %850 = vmatpush1.bf16.msra.mxu0 %v2693_v1  ;;  %743 = vmatprep.mubr.bf16.mxu0 %v2843_v2 }
  0x51   : > { %851 = vmatprep.subr.bf16.mxu0 %v2698_v4 }
  0x54   : > { %852 = vmatpush1.bf16.msra.mxu0 %v2696_v5 }
  0x55   : > { %853 = vmatprep.subr.bf16.mxu0 %v2701_v6 }
  0x57   : > { %2354 = vmatmul.mubr.msk.bf16.gmra.mrb[4].mxu0 %vm439_vm3, %v633_v0 }
  0x58   : > { %854 = vmatpush1.bf16.msra.mxu0 %v2699_v7  ;;  %881 = vmatprep.mubr.bf16.mxu0 %v2843_v2 }
  0x59   : > { %855 = vmatprep.subr.bf16.mxu0 %v2704_v8 }
  0x5c   : > { %856 = vmatpush1.bf16.msra.mxu0 %v2702_v9 }
  0x5d   : > { %857 = vmatprep.subr.bf16.mxu0 %v2707_v10 }
  0x60   : > { %858 = vmatpush1.bf16.msra.mxu0 %v2705_v11 }
  0x61   : > { %859 = vmatprep.subr.bf16.mxu0 %v2710_v12 }
  0x64   : > { %860 = vmatpush1.bf16.msra.mxu0 %v2708_v13 }
  0x65   : > { %993 = vmatprep.subr.bf16.mxu0 %v2713_v15 }
  0x67   : > { %2379 = vmatmul.mubr.msk.bf16.vlgmr.msra.gmra.mrb[0].mxu0 %vm439_vm3, %v2962_v34 }
  0x68   : > { %994 = vmatpush1.bf16.msra.mxu0 %v2711_v16  ;;  %891 = vmatprep.mubr.bf16.mxu0 %v2843_v2 }
  0x69   : > { %995 = vmatprep.subr.bf16.mxu0 %v2716_v17 }
  0x6c   : > { %996 = vmatpush1.bf16.msra.mxu0 %v2714_v18 }
  0x6d   : > { %997 = vmatprep.subr.bf16.mxu0 %v2719_v19 }
  0x6f   : > { %2380 = vmatmul.mubr.msk.bf16.gmra.mrb[4].mxu0 %vm439_vm3, %v2954_v28  ;;  %v3143_v28 = vshrl.u32 %v1056_v27, 7 }
  0x70   : > { %998 = vmatpush1.bf16.msra.mxu0 %v2717_v20  ;;  %1025 = vmatprep.mubr.bf16.mxu0 %v2843_v2 }
  0x71   : > { %999 = vmatprep.subr.bf16.mxu0 %v2722_v21  ;;  %v1058_v29 = vsub.s32 0, %v3143_v28  ;;  %v1062_v32 = vsub.s32 1, %v3143_v28 }
  0x73   : > { %v1059_v33 = vrot.slane %v1054_v31, %v1058_v29  ;;  %v1063_v14 = vrot.slane %v1054_v31, %v1062_v32 }
  0x74   : > { %1000 = vmatpush1.bf16.msra.mxu0 %v2720_v22 }
  0x75   : > { %1001 = vmatprep.subr.bf16.mxu0 %v2725_v23 }
  0x78   : > { %1002 = vmatpush1.bf16.msra.mxu0 %v2723_v24 }
  0x79   : > { %1003 = vmatprep.subr.bf16.mxu0 %v2728_v25 }
  0x7c   : > { %1004 = vmatpush1.bf16.msra.mxu0 %v2726_v26 }
  0x7f   : > { %2405 = vmatmul.mubr.msk.bf16.vlgmr.msra.gmra.mrb[0].mxu0 %vm439_vm3, %v2970_v36 }
  0x80   : > { %1035 = vmatprep.mubr.bf16.mxu0 %v2843_v2 }
  0x87   : > { %2406 = vmatmul.mubr.msk.bf16.gmra.mrb[4].mxu0 %vm439_vm3, %v925_v30 }
  0x88   : > { %2099 = vmatprep.mubr.bf16.mxu0 %v2843_v2 }
 0x152   : > { %v1027_v30 = vpop.f32.mrb[0].mxu0 }
 0x153   : > { %v1066_v34 = vadd.f32 %v1059_v33, %v1027_v30  ;;  %v1029_v35 = vpop.f32.mrb[1].mxu0 }
 0x154   : > { %v1067_v36 = vadd.f32 %v1063_v14, %v1029_v35  ;;  %v1031_v37 = vpop.f32.mrb[2].mxu0 }
 0x155   : > { %v1074_v38 = vmax.f32 %v1066_v34, 0.0  ;;  %v1068_v39 = vadd.f32 %v1059_v33, %v1031_v37  ;;  %v1033_v40 = vpop.f32.mrb[3].mxu0 }
 0x156   : > { %v1075_v41 = vmax.f32 %v1067_v36, 0.0  ;;  %v1069_v42 = vadd.f32 %v1063_v14, %v1033_v40 }
 0x157   : > { %v1076_v43 = vmax.f32 %v1068_v39, 0.0 }
 0x158   : > { %v1077_v44 = vmax.f32 %v1069_v42, 0.0  ;;  %v2609_v45 = vpack.i.bf16 %v1075_v41, %v1074_v38  ;;  %v2845_v42 = vmov 65535  }
 0x15a   : > { %2610 = vrot.lane.b32.xlu0 %v2609_v45, %s2844_s23  ;;  %v1037_v46 = vpop.f32.mrb[4].mxu0  ;;  %v2614_v49 = vpack.i.bf16 %v1077_v44, %v1076_v43 }
 0x15b   : > { %v1070_v47 = vadd.f32 %v1059_v33, %v1037_v46  ;;  %v1039_v48 = vpop.f32.mrb[5].mxu0 }
 0x15c   : > { %v1071_v50 = vadd.f32 %v1063_v14, %v1039_v48  ;;  %v1041_v51 = vpop.f32.mrb[6].mxu0 }
 0x15d   : > { %v1078_v52 = vmax.f32 %v1070_v47, 0.0  ;;  %v1072_v53 = vadd.f32 %v1059_v33, %v1041_v51  ;;  %v1043_v54 = vpop.f32.mrb[7].mxu0 }
 0x15e   : > { %v1079_v55 = vmax.f32 %v1071_v50, 0.0  ;;  %v1073_v56 = vadd.f32 %v1063_v14, %v1043_v54  ;;  %2615 = vrot.lane.b32.xlu0 %v2614_v49, %s2844_s23 }
 0x15f   : > { %v1080_v57 = vmax.f32 %v1072_v53, 0.0 }
 0x160   : > { %v1081_v58 = vmax.f32 %v1073_v56, 0.0  ;;  %v2619_v59 = vpack.i.bf16 %v1079_v55, %v1078_v52  ;;  %v2729_v56 = vld [vmem:[%s3475_s3] sm:$0x7f]  }
 0x162   : > { %2620 = vrot.lane.b32.xlu1 %v2619_v59, %s2844_s23  ;;  %v2624_v60 = vpack.i.bf16 %v1081_v58, %v1080_v57  ;;  %v2732_v59 = vld [vmem:[%s3476_s4 + $0x10] sm:$0xff]  }
 0x166   : > { %2625 = vrot.lane.b32.xlu1 %v2624_v60, %s2844_s23  ;;  %v2733_v60 = vld [vmem:[%s3476_s4 + $0x18] sm:$0xff]  }
 0x1cc   : > { %v2611_v61 = vpop.permute.xlu0 %2610 }
 0x1cd   : > { %v2613_v62 = vunpack.i.h.bf16 %v2611_v61  ;;  %v2612_v63 = vunpack.i.l.bf16 %v2611_v61  ;;  %v2734_v61 = vld [vmem:[%s3476_s4 + $0x20] sm:$0xff]  }
 0x1cf   : > { %v1107_v1 = vsel %vm1106_vm5, %v2612_v63, %v2613_v62  ;;  %v1120_v5 = vmax.f32 %v1075_v41, %v2613_v62  ;;  %v2735_v62 = vld [vmem:[%s3476_s4 + $0x28] sm:$0xff]   ;;  %v2736_v63 = vld [vmem:[%s3476_s4 + $0x30] sm:$0xff]  }
 0x1d0   : > { %v2616_v0 = vpop.permute.xlu0 %2615  ;;  %v1119_v9 = vmax.f32 %v1074_v38, %v1107_v1  ;;  %v2738_v1 = vld [vmem:[%s3476_s4 + $0x40] sm:$0xff]  }
 0x1d1   : > { %v2618_v3 = vunpack.i.h.bf16 %v2616_v0  ;;  %v2617_v4 = vunpack.i.l.bf16 %v2616_v0  ;;  %v1139_v16 = vrot.slane %v1120_v5, 1  ;;  %v2737_v0 = vld [vmem:[%s3476_s4 + $0x38] sm:$0xff]  }
 0x1d2   : > { %v1136_v21 = vrot.slane %v1119_v9, 1 }
 0x1d3   : > { %v1122_v6 = vmax.f32 %v1077_v44, %v2618_v3  ;;  %v1108_v7 = vsel %vm1106_vm5, %v2617_v4, %v2618_v3  ;;  %v2739_v3 = vld [vmem:[%s3476_s4 + $0x48] sm:$0xff]   ;;  %v2740_v4 = vld [vmem:[%s3476_s4 + $0x50] ss:$0 sps:$4 sm:$0x11]  }
 0x1d4   : > { %v2621_v8 = vpop.permute.xlu1 %2620  ;;  %v1121_v10 = vmax.f32 %v1076_v43, %v1108_v7  ;;  %v1183_v43 = vsel %vm1181_vm6, 4294967295, %v2845_v42 }
 0x1d5   : > { %v1140_v11 = vrot.slane %v1122_v6, 1  ;;  %v2623_v12 = vunpack.i.h.bf16 %v2621_v8  ;;  %v2622_v13 = vunpack.i.l.bf16 %v2621_v8  ;;  %v1184_v50 = vsel %vm923_vm1, %v1183_v43, 0  ;;  %v2763_v43 = vld [vmem:[%s3477_s5 + $0x14] ss:$8 sps:$4 sm:$0xff]  }
 0x1d6   : > { %v1137_v15 = vrot.slane %v1121_v10, 1 }
 0x1d7   : > { %v1124_v17 = vmax.f32 %v1079_v55, %v2623_v12  ;;  %v1109_v18 = vsel %vm1106_vm5, %v2622_v13, %v2623_v12  ;;  %v1141_v25 = vsel %vm631_vm4, %v1139_v16, %v1140_v11  ;;  %v2741_v13 = vld [vmem:[%s3477_s5 + $0x58] ss:$8 sps:$4 sm:$0xff]   ;;  %v2744_v16 = vld [vmem:[%s3477_s5 + $0x68] ss:$8 sps:$4 sm:$0xff]  }
 0x1d8   : > { %v1123_v19 = vmax.f32 %v1078_v52, %v1109_v18  ;;  %v2626_v20 = vpop.permute.xlu1 %2625  ;;  %v1138_v26 = vsel %vm631_vm4, %v1136_v21, %v1137_v15  ;;  %v1159_v34 = vmax.f32 %v1120_v5, %v1141_v25  ;;  %v1326_v5 = vsel %vm1324_vm8, %v2740_v4, 0  ;;  %v2747_v18 = vld [vmem:[%s3477_s5 + $0x78] ss:$8 sps:$4 sm:$0xff]   ;;  %v2755_v21 = vld [vmem:[%s3477_s5 + $0x9c] ss:$8 sps:$4 sm:$0xff]  }
 0x1d9   : > { %v1144_v22 = vrot.slane %v1124_v17, 1  ;;  %v2628_v23 = vunpack.i.h.bf16 %v2626_v20  ;;  %v2627_v24 = vunpack.i.l.bf16 %v2626_v20  ;;  %v1158_v38 = vmax.f32 %v1119_v9, %v1138_v26  ;;  %v2750_v20 = vld [vmem:[%s3477_s5 + $0x88] ss:$8 sps:$4 sm:$0xff]   ;;  %v2760_v26 = vld [vmem:[%s3477_s5 + $0x4] ss:$8 sps:$4 sm:$0xff]  }
 0x1da   : > { %v1142_v27 = vrot.slane %v1123_v19, 1 }
 0x1db   : > { %v1126_v31 = vmax.f32 %v1081_v58, %v2628_v23  ;;  %v1110_v33 = vsel %vm1106_vm5, %v2627_v24, %v2628_v23  ;;  %v1145_v14 = vsel %vm631_vm4, %v1140_v11, %v1144_v22  ;;  %v2731_v58 = vld [vmem:[%s3476_s4 + $0x8] sm:$0xff]  }
 0x1dc   : > { %v1125_v30 = vmax.f32 %v1080_v57, %v1110_v33  ;;  %v1161_v35 = vmax.f32 %v1122_v6, %v1145_v14  ;;  %v1143_v36 = vsel %vm631_vm4, %v1137_v15, %v1142_v27  ;;  %v2730_v57 = vld [vmem:[%s3476_s4] sm:$0xff]   ;;  %v2746_v15 = vld [vmem:[%s3477_s5 + $0x6c] ss:$8 sps:$4 sm:$0xff]  }
 0x1dd   : > { %v1148_v37 = vrot.slane %v1126_v31, 1  ;;  %v1160_v39 = vmax.f32 %v1121_v10, %v1143_v36  ;;  %v2743_v6 = vld [vmem:[%s3477_s5 + $0x5c] ss:$8 sps:$4 sm:$0xff]   ;;  %v2431_v23 = vld [vmem:[%s3477_s5 + $0xa8] sm:$0x33] }
 0x1de   : > { %v1146_v40 = vrot.slane %v1125_v30, 1  ;;  %v1169_v41 = vpack.c.bf16 %v1161_v35, %v1159_v34  ;;  %v2443_v24 = vcombine.high %v2431_v23, %v2431_v23  ;;  %v2442_v25 = vcombine.low %v2431_v23, %v2431_v23  ;;  %v2811_v23 = vld [vmem:[%s3477_s5 + $0x164] ss:$8 sps:$4 sm:$0xff]  }
 0x1df   : > { %v1165_v44 = vmax.f32 %v1126_v31, %v1148_v37  ;;  %v1168_v45 = vpack.c.bf16 %v1160_v39, %v1158_v38  ;;  %v1149_v46 = vsel %vm631_vm4, %v1144_v22, %v1148_v37  ;;  %v2753_v22 = vld [vmem:[%s3477_s5 + $0x98] ss:$8 sps:$4 sm:$0xff]  }
 0x1e0   : > { %1191 = vmatprep.subr.bf16.mxu1 %v1169_v41  ;;  %v1163_v47 = vmax.f32 %v1124_v17, %v1149_v46  ;;  %v1147_v48 = vsel %vm631_vm4, %v1142_v27, %v1146_v40  ;;  %v1164_v49 = vmax.f32 %v1125_v30, %v1146_v40  ;;  %v2749_v17 = vld [vmem:[%s3477_s5 + $0x7c] ss:$8 sps:$4 sm:$0xff]   ;;  %v1461_v27 = vsel %vm1459_vm10, %v2442_v25, 0  ;;  %v2758_v40 = vld [vmem:[%s3477_s5] ss:$8 sps:$4 sm:$0xff]  }
 0x1e1   : > { %1192 = vmatpush1.bf16.msra.mxu1 %v1168_v45  ;;  %v1162_v51 = vmax.f32 %v1123_v19, %v1147_v48  ;;  %v2752_v19 = vld [vmem:[%s3477_s5 + $0x8c] ss:$8 sps:$4 sm:$0xff]   ;;  %v2761_v45 = vld [vmem:[%s3477_s5 + $0x10] ss:$8 sps:$4 sm:$0xff]  }
 0x1e2   : > { %v1171_v52 = vpack.c.bf16 %v1165_v44, %v1163_v47  ;;  %v2766_v46 = vld [vmem:[%s3477_s5 + $0x24] ss:$8 sps:$4 sm:$0xff]   ;;  %v2764_v47 = vld [vmem:[%s3477_s5 + $0x20] ss:$8 sps:$4 sm:$0xff]   ;;  %v2769_v48 = vld [vmem:[%s3477_s5 + $0x34] ss:$8 sps:$4 sm:$0xff]  }
 0x1e3   : > { %v1170_v53 = vpack.c.bf16 %v1164_v49, %v1162_v51  ;;  %v2767_v49 = vld [vmem:[%s3477_s5 + $0x30] ss:$8 sps:$4 sm:$0xff]   ;;  %v2814_v25 = vld [vmem:[%s3477_s5 + $0x174] ss:$8 sps:$4 sm:$0xff]  }
 0x1e4   : > { %v1189_v54 = vand.u32 %v1184_v50, %v1171_v52  ;;  %v1379_v51 = vld [vmem:[%s3477_s5 + $0x50] sm:$0x33]  ;;  %v2770_v52 = vld [vmem:[%s3477_s5 + $0x40] ss:$8 sps:$4 sm:$0xff]  }
 0x1e5   : > { %v1186_v55 = vand.u32 %v1184_v50, %v1170_v53  ;;  %v2772_v50 = vld [vmem:[%s3477_s5 + $0x44] ss:$8 sps:$4 sm:$0xff]   ;;  %v2457_v53 = vcombine.high %v1379_v51, %v1379_v51 }
 0x1e6   : > { %1193 = vmatprep.subr.bf16.mxu1 %v1189_v54  ;;  %v2456_v54 = vcombine.low %v1379_v51, %v1379_v51 }
 0x1e7   : > { %1194 = vmatpush1.bf16.msra.mxu1 %v1186_v55 }
 0x1e8   : > { %1328 = vmatprep.subr.bf16.mxu1 %v2843_v2  ;;  %v1567_v55 = vsel %vm1459_vm10, %v2456_v54, 0 }
 0x1ea   : > { %2408 = vmatmul.mubr.msk.bf16.vlgmr.msra.gmra.mrb[0].mxu1 %vm1177_vm7, %v2729_v56  ;;  %v2777_v56 = vld [vmem:[%s3477_s5 + $0xb4] ss:$8 sps:$4 sm:$0xff]  }
 0x1eb   : > { %1329 = vmatpush1.bf16.msra.mxu1 %v2730_v57  ;;  %v2775_v57 = vld [vmem:[%s3477_s5 + $0xb0] ss:$8 sps:$4 sm:$0xff]  }
 0x1ec   : > { %1330 = vmatprep.subr.bf16.mxu1 %v2843_v2 }
 0x1ef   : > { %1331 = vmatpush1.bf16.msra.mxu1 %v2731_v58  ;;  %v2780_v58 = vld [vmem:[%s3477_s5 + $0xc4] ss:$8 sps:$4 sm:$0xff]  }
 0x1f0   : > { %1332 = vmatprep.subr.bf16.mxu1 %v2843_v2 }
 0x1f3   : > { %1333 = vmatpush1.bf16.msra.mxu1 %v2732_v59  ;;  %v2778_v59 = vld [vmem:[%s3477_s5 + $0xc0] ss:$8 sps:$4 sm:$0xff]  }
 0x1f4   : > { %1334 = vmatprep.subr.bf16.mxu1 %v2843_v2 }
 0x1f7   : > { %1335 = vmatpush1.bf16.msra.mxu1 %v2733_v60  ;;  %v2783_v60 = vld [vmem:[%s3477_s5 + $0xd4] ss:$8 sps:$4 sm:$0xff]  }
 0x1f8   : > { %1336 = vmatprep.subr.bf16.mxu1 %v2843_v2 }
 0x1fb   : > { %1337 = vmatpush1.bf16.msra.mxu1 %v2734_v61  ;;  %v2781_v61 = vld [vmem:[%s3477_s5 + $0xd0] ss:$8 sps:$4 sm:$0xff]  }
 0x1fc   : > { %1338 = vmatprep.subr.bf16.mxu1 %v2843_v2 }
 0x1ff   : > { %1339 = vmatpush1.bf16.msra.mxu1 %v2735_v62  ;;  %v2786_v62 = vld [vmem:[%s3477_s5 + $0xe4] ss:$8 sps:$4 sm:$0xff]  }
 0x200   : > { %1340 = vmatprep.subr.bf16.mxu1 %v2843_v2 }
 0x203   : > { %1341 = vmatpush1.bf16.msra.mxu1 %v2736_v63  ;;  %v2784_v63 = vld [vmem:[%s3477_s5 + $0xe0] ss:$8 sps:$4 sm:$0xff]  }
 0x204   : > { %1342 = vmatprep.subr.bf16.mxu1 %v2843_v2 }
 0x207   : > { %1343 = vmatpush1.bf16.msra.mxu1 %v2737_v0  ;;  %v2789_v0 = vld [vmem:[%s3477_s5 + $0xf4] ss:$8 sps:$4 sm:$0xff]  }
 0x208   : > { %1344 = vmatprep.subr.bf16.mxu1 %v2843_v2 }
 0x20b   : > { %1345 = vmatpush1.bf16.msra.mxu1 %v2738_v1  ;;  %v2470_v1 = vld [vmem:[%s3477_s5 + $0x100] sm:$0x33] }
 0x20c   : > { %1346 = vmatprep.subr.bf16.mxu1 %v2843_v2  ;;  %v2482_v4 = vcombine.high %v2470_v1, %v2470_v1 }
 0x20f   : > { %1347 = vmatpush1.bf16.msra.mxu1 %v2739_v3  ;;  %v2787_v3 = vld [vmem:[%s3477_s5 + $0xf0] ss:$8 sps:$4 sm:$0xff]  }
 0x210   : > { %1348 = vmatprep.subr.bf16.mxu1 %v2843_v2 }
 0x213   : > { %1349 = vmatpush1.bf16.msra.mxu1 %v1326_v5  ;;  %v2481_v5 = vcombine.low %v2470_v1, %v2470_v1 }
 0x214   : > { %1466 = vmatprep.subr.bf16.mxu1 %v2743_v6 }
 0x215   : > { %v1688_v6 = vsel %vm1459_vm10, %v2481_v5, 0 }
 0x2bd   : > { %v1225_v7 = vpop.f32.mrb[0].mxu1 }
 0x2be   : > { %v1227_v8 = vpop.f32.mrb[1].mxu1 }
 0x2bf   : > { %v1229_v9 = vpop.f32.mrb[2].mxu1 }
 0x2c0   : > { %v1255_v10 = vpack.c.bf16 %v1229_v9, %v1225_v7  ;;  %v1231_v11 = vpop.f32.mrb[3].mxu1  ;;  %v2794_v7 = vld [vmem:[%s3477_s5 + $0x10c] ss:$8 sps:$4 sm:$0xff]  }
 0x2c1   : > { %v1256_v12 = vpack.c.bf16 %v1231_v11, %v1227_v8  ;;  %v2792_v8 = vld [vmem:[%s3477_s5 + $0x108] ss:$8 sps:$4 sm:$0xff]   ;;  %v2795_v11 = vld [vmem:[%s3477_s5 + $0x118] ss:$8 sps:$4 sm:$0xff]  }
 0x2c3   : > { %2420 = vmatprep.mubr.msk.bf16.mxu1 %vm1320_vm9, %v1256_v12  ;;  %v2800_v12 = vld [vmem:[%s3477_s5 + $0x12c] ss:$8 sps:$4 sm:$0xff]  }
 0x2c4   : > { %1361 = vmatmul.mubr.bf16.vlgmr.msra.gmra.mrb[4].mxu1 %v1255_v10  ;;  %v2797_v10 = vld [vmem:[%s3477_s5 + $0x11c] ss:$8 sps:$4 sm:$0xff]  }
 0x2c5   : > { %1467 = vmatpush1.bf16.msra.mxu1 %v2741_v13  ;;  %1498 = vmatprep.mubr.bf16.mxu1 %v2843_v2  ;;  %v2798_v13 = vld [vmem:[%s3477_s5 + $0x128] ss:$8 sps:$4 sm:$0xff]  }
 0x2c6   : > { %1468 = vmatprep.subr.bf16.mxu1 %v2746_v15  ;;  %v2803_v15 = vld [vmem:[%s3477_s5 + $0x13c] ss:$8 sps:$4 sm:$0xff]  }
 0x2c9   : > { %1469 = vmatpush1.bf16.msra.mxu1 %v2744_v16  ;;  %v2801_v16 = vld [vmem:[%s3477_s5 + $0x138] ss:$8 sps:$4 sm:$0xff]  }
 0x2ca   : > { %1470 = vmatprep.subr.bf16.mxu1 %v2749_v17  ;;  %v2806_v17 = vld [vmem:[%s3477_s5 + $0x14c] ss:$8 sps:$4 sm:$0xff]  }
 0x2cd   : > { %1471 = vmatpush1.bf16.msra.mxu1 %v2747_v18  ;;  %v2495_v18 = vld [vmem:[%s3477_s5 + $0x158] sm:$0x33] }
 0x2ce   : > { %1472 = vmatprep.subr.bf16.mxu1 %v2752_v19  ;;  %v2804_v19 = vld [vmem:[%s3477_s5 + $0x148] ss:$8 sps:$4 sm:$0xff]  }
 0x2d1   : > { %1473 = vmatpush1.bf16.msra.mxu1 %v2750_v20  ;;  %v2507_v20 = vcombine.high %v2495_v18, %v2495_v18 }
 0x2d2   : > { %1474 = vmatprep.subr.bf16.mxu1 %v2755_v21  ;;  %v2506_v21 = vcombine.low %v2495_v18, %v2495_v18 }
 0x2d5   : > { %1475 = vmatpush1.bf16.msra.mxu1 %v2753_v22  ;;  %v1814_v22 = vsel %vm1459_vm10, %v2506_v21, 0  ;;  %v2826_v21 = vld [vmem:[%s3480_s8] sm:$0xff]  }
 0x2d6   : > { %2444 = vmatprep.subr.msk.bf16.mxu1 %vm1459_vm10, %v2443_v24  ;;  %v2809_v24 = vld [vmem:[%s3477_s5 + $0x160] ss:$8 sps:$4 sm:$0xff]  }
 0x2d9   : > { %1477 = vmatpush1.bf16.msra.mxu1 %v1461_v27  ;;  %v2817_v27 = vld [vmem:[%s3477_s5 + $0x184] ss:$8 sps:$4 sm:$0xff]  }
 0x2da   : > { %1572 = vmatprep.subr.bf16.mxu1 %v2760_v26  ;;  %v2812_v26 = vld [vmem:[%s3477_s5 + $0x170] ss:$8 sps:$4 sm:$0xff]  }
 0x397   : > { %v1362_v31 = vpop.f32.mrb[4].mxu1 }
 0x398   : > { %v1364_v33 = vpop.f32.mrb[5].mxu1 }
 0x399   : > { %v1365_v14 = vpop.f32.mrb[6].mxu1  ;;  %v2820_v33 = vld [vmem:[%s3477_s5 + $0x194] ss:$8 sps:$4 sm:$0xff]  }
 0x39a   : > { %v3253_v30 = vpack.c.bf16 %v1365_v14, %v1362_v31  ;;  %v1367_v34 = vpop.f32.mrb[7].mxu1  ;;  %v2815_v31 = vld [vmem:[%s3477_s5 + $0x180] ss:$8 sps:$4 sm:$0xff]   ;;  %v2818_v14 = vld [vmem:[%s3477_s5 + $0x190] ss:$8 sps:$4 sm:$0xff]  }
 0x39b   : > { %v2823_v34 = vld [vmem:[%s3477_s5 + $0x1a4] ss:$8 sps:$4 sm:$0xff]  }
 0x39c   : > { %v1394_v35 = vshrl.u32 %v3253_v30, 16  ;;  %v1396_v36 = vshll.u32 %v3253_v30, 16  ;;  %v1628_v9 = vrot.slane %v3253_v30, 1 }
 0x39e   : > { %v1398_v37 = vrot.slane %v1396_v36, 1  ;;  %v3257_v38 = vrot.slane %v1394_v35, 1  ;;  %v3259_v39 = vrot.slane %v1396_v36, 2  ;;  %v2821_v36 = vld [vmem:[%s3477_s5 + $0x1a0] ss:$8 sps:$4 sm:$0xff]  }
 0x3a0   : > { %v1399_v41 = vor.u32 %v1398_v37, %v1394_v35  ;;  %v1754_v44 = vor.u32 %v3259_v39, %v3257_v38  ;;  %v2520_v35 = vld [vmem:[%s3477_s5 + $0x1b0] sm:$0x33] }
 0x3a1   : > { %v2532_v37 = vcombine.high %v2520_v35, %v2520_v35  ;;  %v2531_v38 = vcombine.low %v2520_v35, %v2520_v35 }
 0x3a2   : > { %2445 = vmatmul.mubr.msk.bf16.vlgmr.msra.gmra.mrb[8].mxu1 %vm1455_vm11, %v1399_v41  ;;  %v1990_v41 = vld [vmem:[%s3478_s6] sm:$0x3] }
 0x3a3   : > { %1573 = vmatpush1.bf16.msra.mxu1 %v2758_v40  ;;  %1604 = vmatprep.mubr.bf16.mxu1 %v2843_v2  ;;  %v1938_v39 = vsel %vm1459_vm10, %v2531_v38, 0  ;;  %v1878_v40 = vrot.slane %v3253_v30, 2 }
 0x3a4   : > { %1574 = vmatprep.subr.bf16.mxu1 %v2763_v43  ;;  %v1995_v43 = vrot.slane %v1990_v41, %v1058_v29 }
 0x3a7   : > { %1575 = vmatpush1.bf16.msra.mxu1 %v2761_v45 }
 0x3a8   : > { %1576 = vmatprep.subr.bf16.mxu1 %v2766_v46 }
 0x3ab   : > { %1577 = vmatpush1.bf16.msra.mxu1 %v2764_v47 }
 0x3ac   : > { %1578 = vmatprep.subr.bf16.mxu1 %v2769_v48 }
 0x3af   : > { %1579 = vmatpush1.bf16.msra.mxu1 %v2767_v49 }
 0x3b0   : > { %1580 = vmatprep.subr.bf16.mxu1 %v2772_v50 }
 0x3b3   : > { %1581 = vmatpush1.bf16.msra.mxu1 %v2770_v52 }
 0x3b4   : > { %2458 = vmatprep.subr.msk.bf16.mxu1 %vm1459_vm10, %v2457_v53 }
 0x3b7   : > { %1583 = vmatpush1.bf16.msra.mxu1 %v1567_v55 }
 0x3b8   : > { %1693 = vmatprep.subr.bf16.mxu1 %v2777_v56 }
 0x3ba   : > { %2459 = vmatmul.mubr.msk.bf16.vlgmr.msra.gmra.mrb[8].mxu1 %vm1455_vm11, %v3253_v30 }
 0x3bb   : > { %1694 = vmatpush1.bf16.msra.mxu1 %v2775_v57  ;;  %1725 = vmatprep.mubr.bf16.mxu1 %v2843_v2 }
 0x3bc   : > { %1695 = vmatprep.subr.bf16.mxu1 %v2780_v58 }
 0x3bf   : > { %1696 = vmatpush1.bf16.msra.mxu1 %v2778_v59 }
 0x3c0   : > { %1697 = vmatprep.subr.bf16.mxu1 %v2783_v60 }
 0x3c3   : > { %1698 = vmatpush1.bf16.msra.mxu1 %v2781_v61 }
 0x3c4   : > { %1699 = vmatprep.subr.bf16.mxu1 %v2786_v62 }
 0x3c7   : > { %1700 = vmatpush1.bf16.msra.mxu1 %v2784_v63 }
 0x3c8   : > { %1701 = vmatprep.subr.bf16.mxu1 %v2789_v0 }
 0x3cb   : > { %1702 = vmatpush1.bf16.msra.mxu1 %v2787_v3 }
 0x3cc   : > { %2483 = vmatprep.subr.msk.bf16.mxu1 %vm1459_vm10, %v2482_v4 }
 0x3cf   : > { %1704 = vmatpush1.bf16.msra.mxu1 %v1688_v6 }
 0x3d0   : > { %1819 = vmatprep.subr.bf16.mxu1 %v2794_v7 }
 0x3d2   : > { %2484 = vmatmul.mubr.msk.bf16.vlgmr.msra.gmra.mrb[8].mxu1 %vm1455_vm11, %v1628_v9 }
 0x3d3   : > { %1820 = vmatpush1.bf16.msra.mxu1 %v2792_v8  ;;  %1851 = vmatprep.mubr.bf16.mxu1 %v2843_v2  ;;  %v2059_v8 = vsel %vm2058_vm13, 4294967295, %v2845_v42  ;;  %v2051_v42 = vld [vmem:[%s3479_s7] sm:$0x7] }
 0x3d4   : > { %1821 = vmatprep.subr.bf16.mxu1 %v2797_v10 }
 0x3d7   : > { %1822 = vmatpush1.bf16.msra.mxu1 %v2795_v11 }
 0x3d8   : > { %1823 = vmatprep.subr.bf16.mxu1 %v2800_v12 }
 0x3db   : > { %1824 = vmatpush1.bf16.msra.mxu1 %v2798_v13 }
 0x3dc   : > { %1825 = vmatprep.subr.bf16.mxu1 %v2803_v15 }
 0x3df   : > { %1826 = vmatpush1.bf16.msra.mxu1 %v2801_v16  ;;  %v2060_v16 = vsel %vm1181_vm6, %v2059_v8, 0 }
 0x3e0   : > { %1827 = vmatprep.subr.bf16.mxu1 %v2806_v17 }
 0x3e3   : > { %1828 = vmatpush1.bf16.msra.mxu1 %v2804_v19 }
 0x3e4   : > { %2508 = vmatprep.subr.msk.bf16.mxu1 %vm1459_vm10, %v2507_v20 }
 0x3e7   : > { %1830 = vmatpush1.bf16.msra.mxu1 %v1814_v22  ;;  %v2827_v22 = vld [vmem:[%s3480_s8 + $0x8] sm:$0xff]  }
 0x3e8   : > { %1943 = vmatprep.subr.bf16.mxu1 %v2811_v23  ;;  %v2828_v23 = vld [vmem:[%s3480_s8 + $0x10] sm:$0xff]  }
 0x3ea   : > { %2509 = vmatmul.mubr.msk.bf16.vlgmr.msra.gmra.mrb[8].mxu1 %vm1455_vm11, %v1754_v44  ;;  %v1999_v44 = vrot.slane %v1990_v41, %v1062_v32 }
 0x3eb   : > { %1944 = vmatpush1.bf16.msra.mxu1 %v2809_v24  ;;  %1975 = vmatprep.mubr.bf16.mxu1 %v2843_v2  ;;  %v2829_v24 = vld [vmem:[%s3480_s8 + $0x18] sm:$0xff]  }
 0x3ec   : > { %1945 = vmatprep.subr.bf16.mxu1 %v2814_v25  ;;  %v2830_v25 = vld [vmem:[%s3480_s8 + $0x20] sm:$0xff]  }
 0x3ef   : > { %1946 = vmatpush1.bf16.msra.mxu1 %v2812_v26  ;;  %v2831_v26 = vld [vmem:[%s3480_s8 + $0x28] sm:$0xff]  }
 0x3f0   : > { %1947 = vmatprep.subr.bf16.mxu1 %v2817_v27  ;;  %v2832_v27 = vld [vmem:[%s3480_s8 + $0x30] sm:$0xff]  }
 0x3f3   : > { %1948 = vmatpush1.bf16.msra.mxu1 %v2815_v31  ;;  %v2833_v31 = vld [vmem:[%s3480_s8 + $0x38] sm:$0xff]  }
 0x3f4   : > { %1949 = vmatprep.subr.bf16.mxu1 %v2820_v33  ;;  %v2834_v33 = vld [vmem:[%s3480_s8 + $0x40] sm:$0xff]  }
 0x3f7   : > { %1950 = vmatpush1.bf16.msra.mxu1 %v2818_v14 }
 0x3f8   : > { %1951 = vmatprep.subr.bf16.mxu1 %v2823_v34 }
 0x3fb   : > { %1952 = vmatpush1.bf16.msra.mxu1 %v2821_v36 }
 0x3fc   : > { %2533 = vmatprep.subr.msk.bf16.mxu1 %vm1459_vm10, %v2532_v37 }
 0x3ff   : > { %1954 = vmatpush1.bf16.msra.mxu1 %v1938_v39 }
 0x402   : > { %2534 = vmatmul.mubr.msk.bf16.vlgmr.msra.gmra.mrb[8].mxu1 %vm1455_vm11, %v1878_v40 }
 0x4d5   : > { %v1977_v45 = vpop.f32.mrb[8].mxu1 }
 0x4d6   : > { %v2002_v46 = vadd.f32 %v1995_v43, %v1977_v45  ;;  %v1979_v47 = vpop.f32.mrb[9].mxu1 }
 0x4d7   : > { %v2003_v48 = vadd.f32 %v1999_v44, %v1979_v47  ;;  %v1981_v49 = vpop.f32.mrb[10].mxu1 }
 0x4d8   : > { %v2006_v50 = vmax.f32 %v2002_v46, 0.0  ;;  %v2004_v51 = vadd.f32 %v1995_v43, %v1981_v49  ;;  %v1983_v30 = vpop.f32.mrb[11].mxu1 }
 0x4d9   : > { %v2007_v52 = vmax.f32 %v2003_v48, 0.0  ;;  %v2005_v53 = vadd.f32 %v1999_v44, %v1983_v30 }
 0x4da   : > { %v2008_v54 = vmax.f32 %v2004_v51, 0.0 }
 0x4db   : > { %v2629_v55 = vpack.i.bf16 %v2007_v52, %v2006_v50  ;;  %v2009_v56 = vmax.f32 %v2005_v53, 0.0 }
 0x4dd   : > { %v2634_v57 = vpack.i.bf16 %v2009_v56, %v2008_v54  ;;  %2630 = vrot.lane.b32.xlu0 %v2629_v55, %s2846_s27 }
 0x4df   : > { %2635 = vrot.lane.b32.xlu1 %v2634_v57, %s2846_s27 }
 0x54f   : > { %v2631_v28 = vpop.permute.xlu0 %2630 }
 0x550   : > { %v2633_v29 = vunpack.i.h.bf16 %v2631_v28  ;;  %v2632_v32 = vunpack.i.l.bf16 %v2631_v28 }
 0x551   : > { %v2636_v58 = vpop.permute.xlu1 %2635 }
 0x552   : > { %v2030_v59 = vmax.f32 %v2007_v52, %v2633_v29  ;;  %v2023_v60 = vsel %vm2022_vm12, %v2632_v32, %v2633_v29  ;;  %v2638_v61 = vunpack.i.h.bf16 %v2636_v58  ;;  %v2637_v62 = vunpack.i.l.bf16 %v2636_v58 }
 0x553   : > { %v2029_v63 = vmax.f32 %v2006_v50, %v2023_v60 }
 0x554   : > { %v2032_v0 = vmax.f32 %v2009_v56, %v2638_v61  ;;  %v2024_v1 = vsel %vm2022_vm12, %v2637_v62, %v2638_v61  ;;  %v2040_v4 = vrot.slane %v2030_v59, 1 }
 0x555   : > { %v2031_v3 = vmax.f32 %v2008_v54, %v2024_v1  ;;  %v2037_v6 = vrot.slane %v2029_v63, 1 }
 0x556   : > { %v2041_v5 = vrot.slane %v2032_v0, 1 }
 0x557   : > { %v2038_v7 = vrot.slane %v2031_v3, 1 }
 0x558   : > { %v2050_v9 = vmax.f32 %v2032_v0, %v2041_v5  ;;  %v2042_v10 = vsel %vm631_vm4, %v2040_v4, %v2041_v5 }
 0x559   : > { %v2049_v11 = vmax.f32 %v2031_v3, %v2038_v7  ;;  %v2039_v12 = vsel %vm631_vm4, %v2037_v6, %v2038_v7  ;;  %v2048_v13 = vmax.f32 %v2030_v59, %v2042_v10 }
 0x55a   : > { %v2047_v15 = vmax.f32 %v2029_v63, %v2039_v12 }
 0x55b   : > { %v2053_v17 = vpack.c.bf16 %v2050_v9, %v2048_v13 }
 0x55c   : > { %v2052_v18 = vpack.c.bf16 %v2049_v11, %v2047_v15 }
 0x55d   : > { %v2065_v19 = vand.u32 %v2060_v16, %v2053_v17 }
 0x55e   : > { %v2062_v20 = vand.u32 %v2060_v16, %v2052_v18 }
 0x55f   : > { %2067 = vmatprep.subr.bf16.mxu0 %v2065_v19 }
 0x560   : > { %2068 = vmatpush1.bf16.msra.mxu0 %v2062_v20 }
 0x561   : > { %2186 = vmatprep.subr.bf16.mxu0 %v2843_v2 }
 0x563   : > { %2535 = vmatmul.mubr.msk.bf16.vlgmr.msra.gmra.mrb[8].mxu0 %vm2054_vm14, %v2051_v42 }
 0x564   : > { %2187 = vmatpush1.bf16.msra.mxu0 %v2826_v21 }
 0x565   : > { %2188 = vmatprep.subr.bf16.mxu0 %v2843_v2 }
 0x568   : > { %2189 = vmatpush1.bf16.msra.mxu0 %v2827_v22 }
 0x569   : > { %2190 = vmatprep.subr.bf16.mxu0 %v2843_v2 }
 0x56c   : > { %2191 = vmatpush1.bf16.msra.mxu0 %v2828_v23 }
 0x56d   : > { %2192 = vmatprep.subr.bf16.mxu0 %v2843_v2 }
 0x570   : > { %2193 = vmatpush1.bf16.msra.mxu0 %v2829_v24 }
 0x571   : > { %2194 = vmatprep.subr.bf16.mxu0 %v2843_v2 }
 0x574   : > { %2195 = vmatpush1.bf16.msra.mxu0 %v2830_v25 }
 0x575   : > { %2196 = vmatprep.subr.bf16.mxu0 %v2843_v2 }
 0x578   : > { %2197 = vmatpush1.bf16.msra.mxu0 %v2831_v26 }
 0x579   : > { %2198 = vmatprep.subr.bf16.mxu0 %v2843_v2 }
 0x57c   : > { %2199 = vmatpush1.bf16.msra.mxu0 %v2832_v27 }
 0x57d   : > { %2200 = vmatprep.subr.bf16.mxu0 %v2843_v2 }
 0x580   : > { %2201 = vmatpush1.bf16.msra.mxu0 %v2833_v31 }
 0x581   : > { %2202 = vmatprep.subr.bf16.mxu0 %v2843_v2 }
 0x584   : > { %2203 = vmatpush1.bf16.msra.mxu0 %v2834_v33 }
 0x636   : > { %v2101_v14 = vpop.f32.mrb[8].mxu0 }
 0x637   : > { %v2103_v34 = vpop.f32.mrb[9].mxu0  ;;  %v2126_v37 = vpack.c.bf16 %v2101_v14, %v2101_v14 }
 0x638   : > { %v2127_v35 = vpack.c.bf16 %v2103_v34, %v2103_v34  ;;  %v2105_v36 = vpop.f32.mrb[10].mxu0 }
 0x639   : > { %v2106_v38 = vpop.f32.mrb[11].mxu0 }
 0x63a   : > { %2545 = vmatprep.mubr.msk.bf16.mxu0 %vm2182_vm15, %v2127_v35 }
 0x63b   : > { %2219 = vmatmul.mubr.bf16.vlgmr.msra.gmra.mrb[12].mxu0 %v2126_v37 }
 0x70e   : > { %v2220_v2 = vpop.f32.mrb[12].mxu0 }
 0x70f   : > { %2227 = vst.msk [vmem:[%s330_s13] sm:$0x1f] %vm2226_vm0, %v2220_v2  ;;  %v2222_v39 = vpop.f32.mrb[13].mxu0 }
 0x710   : > { %v2223_v40 = vpop.f32.mrb[14].mxu0 }
 0x711   : > { %v2224_v41 = vpop.f32.mrb[15].mxu0 }
 0x712 PF: > { %s19_s30 = sadd.s32 1, %s2841_s30  }
 0x713   : > { %p16_p4 = scmp.ge.s32.totalorder %s19_s30, 4  }
 0x715   :  { %18 = sbr.rel (!%p16_p4) target bundleno = 1 (0x1), region = 94 }

</bundles_post_ra>
